<compile_context>
chip_gen: v5e
topology: v5e:2x2
jax: 0.10.0
libtpu: 0.0.40
codegen_flags: <defaults>
</compile_context>

<pallas_src>
import functools

import jax
import jax.numpy as jnp
import numpy as np
from jax.experimental import pallas as pl
from jax.experimental.pallas import tpu as pltpu

KSIZE = 7            # kernel_size=7 in the PyTorch module
PAD = KSIZE // 2     # padding=3


def _spatial_attention_kernel(x_ref, w_ref, o_ref, *, H, W):
    # x_ref: (Bblk, C, H*W)  VMEM block (spatial dims flattened onto lanes)
    # w_ref: (2*K*K,)        SMEM flattened conv weight (OIHW with O=1, I=2)
    # o_ref: (Bblk, 1, H*W)  VMEM lane-dense output block
    Bblk, _, HW = x_ref.shape
    KK = KSIZE * KSIZE

    x = x_ref[...].astype(jnp.float32)            # (Bblk, C, HW)
    avg = jnp.mean(x, axis=1)                     # (Bblk, HW) == torch.mean(dim=1)
    mx = jnp.max(x, axis=1)                       # (Bblk, HW) == torch.max(dim=1)

    # Flat spatial index along lanes.  Row-boundary masks are contiguous
    # ranges of the flat index (single compare); column masks compare the
    # column index (bitwise AND when W is a power of two, no integer div).
    flat = jax.lax.broadcasted_iota(jnp.int32, (Bblk, HW), 1)
    if (W & (W - 1)) == 0:
        col = jnp.bitwise_and(flat, W - 1)
    else:
        col = jax.lax.rem(flat, W)

    # Stage 1: row-shifted, row-masked copies of both pooled maps.
    # One XLU roll + one VALU select per (channel, dh); reused by all 7 dw taps.
    rowA, rowM = [], []
    for kh in range(KSIZE):
        dh = kh - PAD
        # After this roll, lane j holds map[row(j)+dh, col(j)]; out-of-range
        # rows (the flat wraparound lanes) are zeroed by the row mask.
        sh = (-dh * W) % HW
        a_r = pltpu.roll(avg, sh, axis=1) if sh else avg
        m_r = pltpu.roll(mx, sh, axis=1) if sh else mx
        if dh != 0:
            ok = (flat < (H - dh) * W) if dh > 0 else (flat >= (-dh) * W)
            a_r = jnp.where(ok, a_r, 0.0)
            m_r = jnp.where(ok, m_r, 0.0)
        rowA.append(a_r)
        rowM.append(m_r)

    # Stage 2: for each dw, weighted sum over dh (scalar weights from SMEM ->
    # vector * sreg MACs, two partial sums for ILP), then one lane roll + one
    # column mask, accumulated into two independent outer chains.
    accs = [jnp.zeros((Bblk, HW), jnp.float32), jnp.zeros((Bblk, HW), jnp.float32)]
    for kw in range(KSIZE):
        dw = kw - PAD
        s0 = rowA[0] * w_ref[0 * KSIZE + kw] + rowM[0] * w_ref[KK + 0 * KSIZE + kw]
        s1 = rowA[1] * w_ref[1 * KSIZE + kw] + rowM[1] * w_ref[KK + 1 * KSIZE + kw]
        for kh in range(2, KSIZE):
            t = (rowA[kh] * w_ref[kh * KSIZE + kw]
                 + rowM[kh] * w_ref[KK + kh * KSIZE + kw])
            if kh % 2 == 0:
                s0 = s0 + t
            else:
                s1 = s1 + t
        tmp = s0 + s1
        if dw != 0:
            tmp = pltpu.roll(tmp, (-dw) % HW, axis=1)
            ok = (col < (W - dw)) if dw > 0 else (col >= (-dw))
            tmp = jnp.where(ok, tmp, 0.0)
        accs[kw % 2] = accs[kw % 2] + tmp

    acc = accs[0] + accs[1]

    # sigmoid: exp and the approximate reciprocal both go to the EUP slot.
    o_ref[:, 0, :] = pl.reciprocal(1.0 + jnp.exp(-acc), approx=True)


def spatial_attention(x, weight, *, block_b=None):
    """x: (B, C, H, W) float32, weight: (1, 2, K, K) float32 -> (B, 1, H, W)."""
    B, C, H, W = x.shape
    HW = H * W

    if block_b is None:
        # Fold several images per grid step (amortize ~0.35us/step overhead),
        # keep >= 2 steps when B > 1 (two v7x TensorCores), and cap the input
        # block at ~8 MiB so double-buffered inputs fit v7x's 64 MiB VMEM.
        bytes_per_image = C * HW * 4
        cap = max(1, (8 * 1024 * 1024) // bytes_per_image)
        block_b = max(1, min(cap, B // 2)) if B > 1 else 1

    grid_b = pl.cdiv(B, block_b)
    b_pad = grid_b * block_b

    # Lane-dense layout: flatten (H, W) -> H*W on the last axis in the wrapper;
    # reshape back outside the pallas_call.
    x_flat = x.reshape(B, C, HW).astype(jnp.float32)
    if b_pad != B:
        x_flat = jnp.pad(x_flat, ((0, b_pad - B), (0, 0), (0, 0)))
    w_flat = weight.reshape(-1).astype(jnp.float32)        # (2*K*K,)

    kernel = functools.partial(_spatial_attention_kernel, H=H, W=W)

    out = pl.pallas_call(
        kernel,
        out_shape=jax.ShapeDtypeStruct((b_pad, 1, HW), jnp.float32),
        grid=(grid_b,),
        in_specs=[
            pl.BlockSpec((block_b, C, HW), lambda b: (b, 0, 0)),
            pl.BlockSpec(memory_space=pltpu.MemorySpace.SMEM),
        ],
        out_specs=pl.BlockSpec((block_b, 1, HW), lambda b: (b, 0, 0)),
        compiler_params=pltpu.CompilerParams(
            dimension_semantics=("parallel",),
            vmem_limit_bytes=32 * 1024 * 1024,
        ),
    )(x_flat, w_flat)

    return out[:B].reshape(B, 1, H, W)


def reference(x, weight):
    avg = jnp.mean(x, axis=1, keepdims=True)
    mx = jnp.max(x, axis=1, keepdims=True)
    feat = jnp.concatenate([avg, mx], axis=1)
    out = jax.lax.conv_general_dilated(
        feat, weight, window_strides=(1, 1),
        padding=((PAD, PAD), (PAD, PAD)),
        dimension_numbers=("NCHW", "OIHW", "NCHW"))
    return jax.nn.sigmoid(out)


if __name__ == "__main__":
    key = jax.random.PRNGKey(0)
    kx, kw = jax.random.split(key)

    B, C, H, W = 2, 4, 16, 16
    x = jax.random.normal(kx, (B, C, H, W), dtype=jnp.float32)
    # Deterministic synthetic conv weight: nn.Conv2d(2, 1, 7, bias=False) -> (1, 2, 7, 7)
    weight = jax.random.normal(kw, (1, 2, KSIZE, KSIZE), dtype=jnp.float32) * 0.1

    out = jax.block_until_ready(spatial_attention(x, weight))
    ref = jax.block_until_ready(reference(x, weight))

    # Tolerance budget covers the EUP approximate reciprocal in the sigmoid.
    np.testing.assert_allclose(np.asarray(out), np.asarray(ref), rtol=2e-3, atol=2e-3)

    print("KERNEL_OK")
</pallas_src>

<mosaic_0001>
module attributes {stable_mosaic.version = 11 : i64} {
  func.func @_spatial_attention_kernel(%arg0: i32, %arg1: memref<1x4x256xf32, #tpu.memory_space<vmem>>, %arg2: memref<98xf32, #tpu.memory_space<smem>>, %arg3: memref<1x1x256xf32, #tpu.memory_space<vmem>>) attributes {dimension_semantics = [#tpu.dimension_semantics<parallel>], iteration_bounds = array<i64: 2>, scalar_prefetch = 0 : i64, scratch_operands = 0 : i64, tpu.core_type = #tpu.core_type<tc>, window_params = [{transform_indices = @transform_0, window_bounds = array<i64: 1, 4, 256>}, {transform_indices = @transform_1, window_bounds = array<i64: 98>}, {transform_indices = @transform_2, window_bounds = array<i64: 1, 1, 256>}]} {
    %c0 = arith.constant 0 : index
    %c0_0 = arith.constant 0 : index
    %c0_1 = arith.constant 0 : index
    %0 = vector.load %arg1[%c0, %c0_0, %c0_1] : memref<1x4x256xf32, #tpu.memory_space<vmem>>, vector<1x4x256xf32>
    %cst = arith.constant dense<0.000000e+00> : vector<1x256xf32>
    %1 = vector.multi_reduction <add>, %0, %cst [1] : vector<1x4x256xf32> to vector<1x256xf32>
    %cst_2 = arith.constant 4.000000e+00 : f32
    %2 = vector.broadcast %cst_2 : f32 to vector<1x256xf32>
    %3 = arith.divf %1, %2 : vector<1x256xf32>
    %cst_3 = arith.constant dense<0xFF800000> : vector<1x256xf32>
    %4 = vector.multi_reduction <maximumf>, %0, %cst_3 [1] : vector<1x4x256xf32> to vector<1x256xf32>
    %5 = tpu.iota {dimensions = array<i32: 1>} : vector<1x256xi32>
    %c15_i32 = arith.constant 15 : i32
    %6 = vector.broadcast %c15_i32 : i32 to vector<1x256xi32>
    %7 = arith.andi %5, %6 : vector<1x256xi32>
    %c48_i32 = arith.constant 48 : i32
    %8 = tpu.dynamic_rotate %3 by %c48_i32 dim 1 : vector<1x256xf32>, i32 -> vector<1x256xf32>
    %c48_i32_4 = arith.constant 48 : i32
    %9 = tpu.dynamic_rotate %4 by %c48_i32_4 dim 1 : vector<1x256xf32>, i32 -> vector<1x256xf32>
    %c48_i32_5 = arith.constant 48 : i32
    %10 = vector.broadcast %c48_i32_5 : i32 to vector<1x256xi32>
    %11 = arith.cmpi sge, %5, %10 : vector<1x256xi32>
    %cst_6 = arith.constant 0.000000e+00 : f32
    %12 = vector.broadcast %cst_6 : f32 to vector<1x256xf32>
    %13 = arith.select %11, %8, %12 : vector<1x256xi1>, vector<1x256xf32>
    %cst_7 = arith.constant 0.000000e+00 : f32
    %14 = vector.broadcast %cst_7 : f32 to vector<1x256xf32>
    %15 = arith.select %11, %9, %14 : vector<1x256xi1>, vector<1x256xf32>
    %c32_i32 = arith.constant 32 : i32
    %16 = tpu.dynamic_rotate %3 by %c32_i32 dim 1 : vector<1x256xf32>, i32 -> vector<1x256xf32>
    %c32_i32_8 = arith.constant 32 : i32
    %17 = tpu.dynamic_rotate %4 by %c32_i32_8 dim 1 : vector<1x256xf32>, i32 -> vector<1x256xf32>
    %c32_i32_9 = arith.constant 32 : i32
    %18 = vector.broadcast %c32_i32_9 : i32 to vector<1x256xi32>
    %19 = arith.cmpi sge, %5, %18 : vector<1x256xi32>
    %cst_10 = arith.constant 0.000000e+00 : f32
    %20 = vector.broadcast %cst_10 : f32 to vector<1x256xf32>
    %21 = arith.select %19, %16, %20 : vector<1x256xi1>, vector<1x256xf32>
    %cst_11 = arith.constant 0.000000e+00 : f32
    %22 = vector.broadcast %cst_11 : f32 to vector<1x256xf32>
    %23 = arith.select %19, %17, %22 : vector<1x256xi1>, vector<1x256xf32>
    %c16_i32 = arith.constant 16 : i32
    %24 = tpu.dynamic_rotate %3 by %c16_i32 dim 1 : vector<1x256xf32>, i32 -> vector<1x256xf32>
    %c16_i32_12 = arith.constant 16 : i32
    %25 = tpu.dynamic_rotate %4 by %c16_i32_12 dim 1 : vector<1x256xf32>, i32 -> vector<1x256xf32>
    %c16_i32_13 = arith.constant 16 : i32
    %26 = vector.broadcast %c16_i32_13 : i32 to vector<1x256xi32>
    %27 = arith.cmpi sge, %5, %26 : vector<1x256xi32>
    %cst_14 = arith.constant 0.000000e+00 : f32
    %28 = vector.broadcast %cst_14 : f32 to vector<1x256xf32>
    %29 = arith.select %27, %24, %28 : vector<1x256xi1>, vector<1x256xf32>
    %cst_15 = arith.constant 0.000000e+00 : f32
    %30 = vector.broadcast %cst_15 : f32 to vector<1x256xf32>
    %31 = arith.select %27, %25, %30 : vector<1x256xi1>, vector<1x256xf32>
    %c240_i32 = arith.constant 240 : i32
    %32 = tpu.dynamic_rotate %3 by %c240_i32 dim 1 : vector<1x256xf32>, i32 -> vector<1x256xf32>
    %c240_i32_16 = arith.constant 240 : i32
    %33 = tpu.dynamic_rotate %4 by %c240_i32_16 dim 1 : vector<1x256xf32>, i32 -> vector<1x256xf32>
    %c240_i32_17 = arith.constant 240 : i32
    %34 = vector.broadcast %c240_i32_17 : i32 to vector<1x256xi32>
    %35 = arith.cmpi slt, %5, %34 : vector<1x256xi32>
    %cst_18 = arith.constant 0.000000e+00 : f32
    %36 = vector.broadcast %cst_18 : f32 to vector<1x256xf32>
    %37 = arith.select %35, %32, %36 : vector<1x256xi1>, vector<1x256xf32>
    %cst_19 = arith.constant 0.000000e+00 : f32
    %38 = vector.broadcast %cst_19 : f32 to vector<1x256xf32>
    %39 = arith.select %35, %33, %38 : vector<1x256xi1>, vector<1x256xf32>
    %c224_i32 = arith.constant 224 : i32
    %40 = tpu.dynamic_rotate %3 by %c224_i32 dim 1 : vector<1x256xf32>, i32 -> vector<1x256xf32>
    %c224_i32_20 = arith.constant 224 : i32
    %41 = tpu.dynamic_rotate %4 by %c224_i32_20 dim 1 : vector<1x256xf32>, i32 -> vector<1x256xf32>
    %c224_i32_21 = arith.constant 224 : i32
    %42 = vector.broadcast %c224_i32_21 : i32 to vector<1x256xi32>
    %43 = arith.cmpi slt, %5, %42 : vector<1x256xi32>
    %cst_22 = arith.constant 0.000000e+00 : f32
    %44 = vector.broadcast %cst_22 : f32 to vector<1x256xf32>
    %45 = arith.select %43, %40, %44 : vector<1x256xi1>, vector<1x256xf32>
    %cst_23 = arith.constant 0.000000e+00 : f32
    %46 = vector.broadcast %cst_23 : f32 to vector<1x256xf32>
    %47 = arith.select %43, %41, %46 : vector<1x256xi1>, vector<1x256xf32>
    %c208_i32 = arith.constant 208 : i32
    %48 = tpu.dynamic_rotate %3 by %c208_i32 dim 1 : vector<1x256xf32>, i32 -> vector<1x256xf32>
    %c208_i32_24 = arith.constant 208 : i32
    %49 = tpu.dynamic_rotate %4 by %c208_i32_24 dim 1 : vector<1x256xf32>, i32 -> vector<1x256xf32>
    %c208_i32_25 = arith.constant 208 : i32
    %50 = vector.broadcast %c208_i32_25 : i32 to vector<1x256xi32>
    %51 = arith.cmpi slt, %5, %50 : vector<1x256xi32>
    %cst_26 = arith.constant 0.000000e+00 : f32
    %52 = vector.broadcast %cst_26 : f32 to vector<1x256xf32>
    %53 = arith.select %51, %48, %52 : vector<1x256xi1>, vector<1x256xf32>
    %cst_27 = arith.constant 0.000000e+00 : f32
    %54 = vector.broadcast %cst_27 : f32 to vector<1x256xf32>
    %55 = arith.select %51, %49, %54 : vector<1x256xi1>, vector<1x256xf32>
    %cst_28 = arith.constant 0.000000e+00 : f32
    %56 = vector.broadcast %cst_28 : f32 to vector<1x256xf32>
    %cst_29 = arith.constant 0.000000e+00 : f32
    %57 = vector.broadcast %cst_29 : f32 to vector<1x256xf32>
    %c0_30 = arith.constant 0 : index
    %58 = memref.load %arg2[%c0_30] : memref<98xf32, #tpu.memory_space<smem>>
    %59 = vector.broadcast %58 : f32 to vector<1x256xf32>
    %60 = arith.mulf %13, %59 : vector<1x256xf32>
    %c49 = arith.constant 49 : index
    %61 = memref.load %arg2[%c49] : memref<98xf32, #tpu.memory_space<smem>>
    %62 = vector.broadcast %61 : f32 to vector<1x256xf32>
    %63 = arith.mulf %15, %62 : vector<1x256xf32>
    %64 = arith.addf %60, %63 : vector<1x256xf32>
    %c7 = arith.constant 7 : index
    %65 = memref.load %arg2[%c7] : memref<98xf32, #tpu.memory_space<smem>>
    %66 = vector.broadcast %65 : f32 to vector<1x256xf32>
    %67 = arith.mulf %21, %66 : vector<1x256xf32>
    %c56 = arith.constant 56 : index
    %68 = memref.load %arg2[%c56] : memref<98xf32, #tpu.memory_space<smem>>
    %69 = vector.broadcast %68 : f32 to vector<1x256xf32>
    %70 = arith.mulf %23, %69 : vector<1x256xf32>
    %71 = arith.addf %67, %70 : vector<1x256xf32>
    %c14 = arith.constant 14 : index
    %72 = memref.load %arg2[%c14] : memref<98xf32, #tpu.memory_space<smem>>
    %73 = vector.broadcast %72 : f32 to vector<1x256xf32>
    %74 = arith.mulf %29, %73 : vector<1x256xf32>
    %c63 = arith.constant 63 : index
    %75 = memref.load %arg2[%c63] : memref<98xf32, #tpu.memory_space<smem>>
    %76 = vector.broadcast %75 : f32 to vector<1x256xf32>
    %77 = arith.mulf %31, %76 : vector<1x256xf32>
    %78 = arith.addf %74, %77 : vector<1x256xf32>
    %79 = arith.addf %64, %78 : vector<1x256xf32>
    %c21 = arith.constant 21 : index
    %80 = memref.load %arg2[%c21] : memref<98xf32, #tpu.memory_space<smem>>
    %81 = vector.broadcast %80 : f32 to vector<1x256xf32>
    %82 = arith.mulf %3, %81 : vector<1x256xf32>
    %c70 = arith.constant 70 : index
    %83 = memref.load %arg2[%c70] : memref<98xf32, #tpu.memory_space<smem>>
    %84 = vector.broadcast %83 : f32 to vector<1x256xf32>
    %85 = arith.mulf %4, %84 : vector<1x256xf32>
    %86 = arith.addf %82, %85 : vector<1x256xf32>
    %87 = arith.addf %71, %86 : vector<1x256xf32>
    %c28 = arith.constant 28 : index
    %88 = memref.load %arg2[%c28] : memref<98xf32, #tpu.memory_space<smem>>
    %89 = vector.broadcast %88 : f32 to vector<1x256xf32>
    %90 = arith.mulf %37, %89 : vector<1x256xf32>
    %c77 = arith.constant 77 : index
    %91 = memref.load %arg2[%c77] : memref<98xf32, #tpu.memory_space<smem>>
    %92 = vector.broadcast %91 : f32 to vector<1x256xf32>
    %93 = arith.mulf %39, %92 : vector<1x256xf32>
    %94 = arith.addf %90, %93 : vector<1x256xf32>
    %95 = arith.addf %79, %94 : vector<1x256xf32>
    %c35 = arith.constant 35 : index
    %96 = memref.load %arg2[%c35] : memref<98xf32, #tpu.memory_space<smem>>
    %97 = vector.broadcast %96 : f32 to vector<1x256xf32>
    %98 = arith.mulf %45, %97 : vector<1x256xf32>
    %c84 = arith.constant 84 : index
    %99 = memref.load %arg2[%c84] : memref<98xf32, #tpu.memory_space<smem>>
    %100 = vector.broadcast %99 : f32 to vector<1x256xf32>
    %101 = arith.mulf %47, %100 : vector<1x256xf32>
    %102 = arith.addf %98, %101 : vector<1x256xf32>
    %103 = arith.addf %87, %102 : vector<1x256xf32>
    %c42 = arith.constant 42 : index
    %104 = memref.load %arg2[%c42] : memref<98xf32, #tpu.memory_space<smem>>
    %105 = vector.broadcast %104 : f32 to vector<1x256xf32>
    %106 = arith.mulf %53, %105 : vector<1x256xf32>
    %c91 = arith.constant 91 : index
    %107 = memref.load %arg2[%c91] : memref<98xf32, #tpu.memory_space<smem>>
    %108 = vector.broadcast %107 : f32 to vector<1x256xf32>
    %109 = arith.mulf %55, %108 : vector<1x256xf32>
    %110 = arith.addf %106, %109 : vector<1x256xf32>
    %111 = arith.addf %95, %110 : vector<1x256xf32>
    %112 = arith.addf %111, %103 : vector<1x256xf32>
    %c3_i32 = arith.constant 3 : i32
    %113 = tpu.dynamic_rotate %112 by %c3_i32 dim 1 : vector<1x256xf32>, i32 -> vector<1x256xf32>
    %c3_i32_31 = arith.constant 3 : i32
    %114 = vector.broadcast %c3_i32_31 : i32 to vector<1x256xi32>
    %115 = arith.cmpi sge, %7, %114 : vector<1x256xi32>
    %cst_32 = arith.constant 0.000000e+00 : f32
    %116 = vector.broadcast %cst_32 : f32 to vector<1x256xf32>
    %117 = arith.select %115, %113, %116 : vector<1x256xi1>, vector<1x256xf32>
    %118 = arith.addf %56, %117 : vector<1x256xf32>
    %c1 = arith.constant 1 : index
    %119 = memref.load %arg2[%c1] : memref<98xf32, #tpu.memory_space<smem>>
    %120 = vector.broadcast %119 : f32 to vector<1x256xf32>
    %121 = arith.mulf %13, %120 : vector<1x256xf32>
    %c50 = arith.constant 50 : index
    %122 = memref.load %arg2[%c50] : memref<98xf32, #tpu.memory_space<smem>>
    %123 = vector.broadcast %122 : f32 to vector<1x256xf32>
    %124 = arith.mulf %15, %123 : vector<1x256xf32>
    %125 = arith.addf %121, %124 : vector<1x256xf32>
    %c8 = arith.constant 8 : index
    %126 = memref.load %arg2[%c8] : memref<98xf32, #tpu.memory_space<smem>>
    %127 = vector.broadcast %126 : f32 to vector<1x256xf32>
    %128 = arith.mulf %21, %127 : vector<1x256xf32>
    %c57 = arith.constant 57 : index
    %129 = memref.load %arg2[%c57] : memref<98xf32, #tpu.memory_space<smem>>
    %130 = vector.broadcast %129 : f32 to vector<1x256xf32>
    %131 = arith.mulf %23, %130 : vector<1x256xf32>
    %132 = arith.addf %128, %131 : vector<1x256xf32>
    %c15 = arith.constant 15 : index
    %133 = memref.load %arg2[%c15] : memref<98xf32, #tpu.memory_space<smem>>
    %134 = vector.broadcast %133 : f32 to vector<1x256xf32>
    %135 = arith.mulf %29, %134 : vector<1x256xf32>
    %c64 = arith.constant 64 : index
    %136 = memref.load %arg2[%c64] : memref<98xf32, #tpu.memory_space<smem>>
    %137 = vector.broadcast %136 : f32 to vector<1x256xf32>
    %138 = arith.mulf %31, %137 : vector<1x256xf32>
    %139 = arith.addf %135, %138 : vector<1x256xf32>
    %140 = arith.addf %125, %139 : vector<1x256xf32>
    %c22 = arith.constant 22 : index
    %141 = memref.load %arg2[%c22] : memref<98xf32, #tpu.memory_space<smem>>
    %142 = vector.broadcast %141 : f32 to vector<1x256xf32>
    %143 = arith.mulf %3, %142 : vector<1x256xf32>
    %c71 = arith.constant 71 : index
    %144 = memref.load %arg2[%c71] : memref<98xf32, #tpu.memory_space<smem>>
    %145 = vector.broadcast %144 : f32 to vector<1x256xf32>
    %146 = arith.mulf %4, %145 : vector<1x256xf32>
    %147 = arith.addf %143, %146 : vector<1x256xf32>
    %148 = arith.addf %132, %147 : vector<1x256xf32>
    %c29 = arith.constant 29 : index
    %149 = memref.load %arg2[%c29] : memref<98xf32, #tpu.memory_space<smem>>
    %150 = vector.broadcast %149 : f32 to vector<1x256xf32>
    %151 = arith.mulf %37, %150 : vector<1x256xf32>
    %c78 = arith.constant 78 : index
    %152 = memref.load %arg2[%c78] : memref<98xf32, #tpu.memory_space<smem>>
    %153 = vector.broadcast %152 : f32 to vector<1x256xf32>
    %154 = arith.mulf %39, %153 : vector<1x256xf32>
    %155 = arith.addf %151, %154 : vector<1x256xf32>
    %156 = arith.addf %140, %155 : vector<1x256xf32>
    %c36 = arith.constant 36 : index
    %157 = memref.load %arg2[%c36] : memref<98xf32, #tpu.memory_space<smem>>
    %158 = vector.broadcast %157 : f32 to vector<1x256xf32>
    %159 = arith.mulf %45, %158 : vector<1x256xf32>
    %c85 = arith.constant 85 : index
    %160 = memref.load %arg2[%c85] : memref<98xf32, #tpu.memory_space<smem>>
    %161 = vector.broadcast %160 : f32 to vector<1x256xf32>
    %162 = arith.mulf %47, %161 : vector<1x256xf32>
    %163 = arith.addf %159, %162 : vector<1x256xf32>
    %164 = arith.addf %148, %163 : vector<1x256xf32>
    %c43 = arith.constant 43 : index
    %165 = memref.load %arg2[%c43] : memref<98xf32, #tpu.memory_space<smem>>
    %166 = vector.broadcast %165 : f32 to vector<1x256xf32>
    %167 = arith.mulf %53, %166 : vector<1x256xf32>
    %c92 = arith.constant 92 : index
    %168 = memref.load %arg2[%c92] : memref<98xf32, #tpu.memory_space<smem>>
    %169 = vector.broadcast %168 : f32 to vector<1x256xf32>
    %170 = arith.mulf %55, %169 : vector<1x256xf32>
    %171 = arith.addf %167, %170 : vector<1x256xf32>
    %172 = arith.addf %156, %171 : vector<1x256xf32>
    %173 = arith.addf %172, %164 : vector<1x256xf32>
    %c2_i32 = arith.constant 2 : i32
    %174 = tpu.dynamic_rotate %173 by %c2_i32 dim 1 : vector<1x256xf32>, i32 -> vector<1x256xf32>
    %c2_i32_33 = arith.constant 2 : i32
    %175 = vector.broadcast %c2_i32_33 : i32 to vector<1x256xi32>
    %176 = arith.cmpi sge, %7, %175 : vector<1x256xi32>
    %cst_34 = arith.constant 0.000000e+00 : f32
    %177 = vector.broadcast %cst_34 : f32 to vector<1x256xf32>
    %178 = arith.select %176, %174, %177 : vector<1x256xi1>, vector<1x256xf32>
    %179 = arith.addf %57, %178 : vector<1x256xf32>
    %c2 = arith.constant 2 : index
    %180 = memref.load %arg2[%c2] : memref<98xf32, #tpu.memory_space<smem>>
    %181 = vector.broadcast %180 : f32 to vector<1x256xf32>
    %182 = arith.mulf %13, %181 : vector<1x256xf32>
    %c51 = arith.constant 51 : index
    %183 = memref.load %arg2[%c51] : memref<98xf32, #tpu.memory_space<smem>>
    %184 = vector.broadcast %183 : f32 to vector<1x256xf32>
    %185 = arith.mulf %15, %184 : vector<1x256xf32>
    %186 = arith.addf %182, %185 : vector<1x256xf32>
    %c9 = arith.constant 9 : index
    %187 = memref.load %arg2[%c9] : memref<98xf32, #tpu.memory_space<smem>>
    %188 = vector.broadcast %187 : f32 to vector<1x256xf32>
    %189 = arith.mulf %21, %188 : vector<1x256xf32>
    %c58 = arith.constant 58 : index
    %190 = memref.load %arg2[%c58] : memref<98xf32, #tpu.memory_space<smem>>
    %191 = vector.broadcast %190 : f32 to vector<1x256xf32>
    %192 = arith.mulf %23, %191 : vector<1x256xf32>
    %193 = arith.addf %189, %192 : vector<1x256xf32>
    %c16 = arith.constant 16 : index
    %194 = memref.load %arg2[%c16] : memref<98xf32, #tpu.memory_space<smem>>
    %195 = vector.broadcast %194 : f32 to vector<1x256xf32>
    %196 = arith.mulf %29, %195 : vector<1x256xf32>
    %c65 = arith.constant 65 : index
    %197 = memref.load %arg2[%c65] : memref<98xf32, #tpu.memory_space<smem>>
    %198 = vector.broadcast %197 : f32 to vector<1x256xf32>
    %199 = arith.mulf %31, %198 : vector<1x256xf32>
    %200 = arith.addf %196, %199 : vector<1x256xf32>
    %201 = arith.addf %186, %200 : vector<1x256xf32>
    %c23 = arith.constant 23 : index
    %202 = memref.load %arg2[%c23] : memref<98xf32, #tpu.memory_space<smem>>
    %203 = vector.broadcast %202 : f32 to vector<1x256xf32>
    %204 = arith.mulf %3, %203 : vector<1x256xf32>
    %c72 = arith.constant 72 : index
    %205 = memref.load %arg2[%c72] : memref<98xf32, #tpu.memory_space<smem>>
    %206 = vector.broadcast %205 : f32 to vector<1x256xf32>
    %207 = arith.mulf %4, %206 : vector<1x256xf32>
    %208 = arith.addf %204, %207 : vector<1x256xf32>
    %209 = arith.addf %193, %208 : vector<1x256xf32>
    %c30 = arith.constant 30 : index
    %210 = memref.load %arg2[%c30] : memref<98xf32, #tpu.memory_space<smem>>
    %211 = vector.broadcast %210 : f32 to vector<1x256xf32>
    %212 = arith.mulf %37, %211 : vector<1x256xf32>
    %c79 = arith.constant 79 : index
    %213 = memref.load %arg2[%c79] : memref<98xf32, #tpu.memory_space<smem>>
    %214 = vector.broadcast %213 : f32 to vector<1x256xf32>
    %215 = arith.mulf %39, %214 : vector<1x256xf32>
    %216 = arith.addf %212, %215 : vector<1x256xf32>
    %217 = arith.addf %201, %216 : vector<1x256xf32>
    %c37 = arith.constant 37 : index
    %218 = memref.load %arg2[%c37] : memref<98xf32, #tpu.memory_space<smem>>
    %219 = vector.broadcast %218 : f32 to vector<1x256xf32>
    %220 = arith.mulf %45, %219 : vector<1x256xf32>
    %c86 = arith.constant 86 : index
    %221 = memref.load %arg2[%c86] : memref<98xf32, #tpu.memory_space<smem>>
    %222 = vector.broadcast %221 : f32 to vector<1x256xf32>
    %223 = arith.mulf %47, %222 : vector<1x256xf32>
    %224 = arith.addf %220, %223 : vector<1x256xf32>
    %225 = arith.addf %209, %224 : vector<1x256xf32>
    %c44 = arith.constant 44 : index
    %226 = memref.load %arg2[%c44] : memref<98xf32, #tpu.memory_space<smem>>
    %227 = vector.broadcast %226 : f32 to vector<1x256xf32>
    %228 = arith.mulf %53, %227 : vector<1x256xf32>
    %c93 = arith.constant 93 : index
    %229 = memref.load %arg2[%c93] : memref<98xf32, #tpu.memory_space<smem>>
    %230 = vector.broadcast %229 : f32 to vector<1x256xf32>
    %231 = arith.mulf %55, %230 : vector<1x256xf32>
    %232 = arith.addf %228, %231 : vector<1x256xf32>
    %233 = arith.addf %217, %232 : vector<1x256xf32>
    %234 = arith.addf %233, %225 : vector<1x256xf32>
    %c1_i32 = arith.constant 1 : i32
    %235 = tpu.dynamic_rotate %234 by %c1_i32 dim 1 : vector<1x256xf32>, i32 -> vector<1x256xf32>
    %c1_i32_35 = arith.constant 1 : i32
    %236 = vector.broadcast %c1_i32_35 : i32 to vector<1x256xi32>
    %237 = arith.cmpi sge, %7, %236 : vector<1x256xi32>
    %cst_36 = arith.constant 0.000000e+00 : f32
    %238 = vector.broadcast %cst_36 : f32 to vector<1x256xf32>
    %239 = arith.select %237, %235, %238 : vector<1x256xi1>, vector<1x256xf32>
    %240 = arith.addf %118, %239 : vector<1x256xf32>
    %c3 = arith.constant 3 : index
    %241 = memref.load %arg2[%c3] : memref<98xf32, #tpu.memory_space<smem>>
    %242 = vector.broadcast %241 : f32 to vector<1x256xf32>
    %243 = arith.mulf %13, %242 : vector<1x256xf32>
    %c52 = arith.constant 52 : index
    %244 = memref.load %arg2[%c52] : memref<98xf32, #tpu.memory_space<smem>>
    %245 = vector.broadcast %244 : f32 to vector<1x256xf32>
    %246 = arith.mulf %15, %245 : vector<1x256xf32>
    %247 = arith.addf %243, %246 : vector<1x256xf32>
    %c10 = arith.constant 10 : index
    %248 = memref.load %arg2[%c10] : memref<98xf32, #tpu.memory_space<smem>>
    %249 = vector.broadcast %248 : f32 to vector<1x256xf32>
    %250 = arith.mulf %21, %249 : vector<1x256xf32>
    %c59 = arith.constant 59 : index
    %251 = memref.load %arg2[%c59] : memref<98xf32, #tpu.memory_space<smem>>
    %252 = vector.broadcast %251 : f32 to vector<1x256xf32>
    %253 = arith.mulf %23, %252 : vector<1x256xf32>
    %254 = arith.addf %250, %253 : vector<1x256xf32>
    %c17 = arith.constant 17 : index
    %255 = memref.load %arg2[%c17] : memref<98xf32, #tpu.memory_space<smem>>
    %256 = vector.broadcast %255 : f32 to vector<1x256xf32>
    %257 = arith.mulf %29, %256 : vector<1x256xf32>
    %c66 = arith.constant 66 : index
    %258 = memref.load %arg2[%c66] : memref<98xf32, #tpu.memory_space<smem>>
    %259 = vector.broadcast %258 : f32 to vector<1x256xf32>
    %260 = arith.mulf %31, %259 : vector<1x256xf32>
    %261 = arith.addf %257, %260 : vector<1x256xf32>
    %262 = arith.addf %247, %261 : vector<1x256xf32>
    %c24 = arith.constant 24 : index
    %263 = memref.load %arg2[%c24] : memref<98xf32, #tpu.memory_space<smem>>
    %264 = vector.broadcast %263 : f32 to vector<1x256xf32>
    %265 = arith.mulf %3, %264 : vector<1x256xf32>
    %c73 = arith.constant 73 : index
    %266 = memref.load %arg2[%c73] : memref<98xf32, #tpu.memory_space<smem>>
    %267 = vector.broadcast %266 : f32 to vector<1x256xf32>
    %268 = arith.mulf %4, %267 : vector<1x256xf32>
    %269 = arith.addf %265, %268 : vector<1x256xf32>
    %270 = arith.addf %254, %269 : vector<1x256xf32>
    %c31 = arith.constant 31 : index
    %271 = memref.load %arg2[%c31] : memref<98xf32, #tpu.memory_space<smem>>
    %272 = vector.broadcast %271 : f32 to vector<1x256xf32>
    %273 = arith.mulf %37, %272 : vector<1x256xf32>
    %c80 = arith.constant 80 : index
    %274 = memref.load %arg2[%c80] : memref<98xf32, #tpu.memory_space<smem>>
    %275 = vector.broadcast %274 : f32 to vector<1x256xf32>
    %276 = arith.mulf %39, %275 : vector<1x256xf32>
    %277 = arith.addf %273, %276 : vector<1x256xf32>
    %278 = arith.addf %262, %277 : vector<1x256xf32>
    %c38 = arith.constant 38 : index
    %279 = memref.load %arg2[%c38] : memref<98xf32, #tpu.memory_space<smem>>
    %280 = vector.broadcast %279 : f32 to vector<1x256xf32>
    %281 = arith.mulf %45, %280 : vector<1x256xf32>
    %c87 = arith.constant 87 : index
    %282 = memref.load %arg2[%c87] : memref<98xf32, #tpu.memory_space<smem>>
    %283 = vector.broadcast %282 : f32 to vector<1x256xf32>
    %284 = arith.mulf %47, %283 : vector<1x256xf32>
    %285 = arith.addf %281, %284 : vector<1x256xf32>
    %286 = arith.addf %270, %285 : vector<1x256xf32>
    %c45 = arith.constant 45 : index
    %287 = memref.load %arg2[%c45] : memref<98xf32, #tpu.memory_space<smem>>
    %288 = vector.broadcast %287 : f32 to vector<1x256xf32>
    %289 = arith.mulf %53, %288 : vector<1x256xf32>
    %c94 = arith.constant 94 : index
    %290 = memref.load %arg2[%c94] : memref<98xf32, #tpu.memory_space<smem>>
    %291 = vector.broadcast %290 : f32 to vector<1x256xf32>
    %292 = arith.mulf %55, %291 : vector<1x256xf32>
    %293 = arith.addf %289, %292 : vector<1x256xf32>
    %294 = arith.addf %278, %293 : vector<1x256xf32>
    %295 = arith.addf %294, %286 : vector<1x256xf32>
    %296 = arith.addf %179, %295 : vector<1x256xf32>
    %c4 = arith.constant 4 : index
    %297 = memref.load %arg2[%c4] : memref<98xf32, #tpu.memory_space<smem>>
    %298 = vector.broadcast %297 : f32 to vector<1x256xf32>
    %299 = arith.mulf %13, %298 : vector<1x256xf32>
    %c53 = arith.constant 53 : index
    %300 = memref.load %arg2[%c53] : memref<98xf32, #tpu.memory_space<smem>>
    %301 = vector.broadcast %300 : f32 to vector<1x256xf32>
    %302 = arith.mulf %15, %301 : vector<1x256xf32>
    %303 = arith.addf %299, %302 : vector<1x256xf32>
    %c11 = arith.constant 11 : index
    %304 = memref.load %arg2[%c11] : memref<98xf32, #tpu.memory_space<smem>>
    %305 = vector.broadcast %304 : f32 to vector<1x256xf32>
    %306 = arith.mulf %21, %305 : vector<1x256xf32>
    %c60 = arith.constant 60 : index
    %307 = memref.load %arg2[%c60] : memref<98xf32, #tpu.memory_space<smem>>
    %308 = vector.broadcast %307 : f32 to vector<1x256xf32>
    %309 = arith.mulf %23, %308 : vector<1x256xf32>
    %310 = arith.addf %306, %309 : vector<1x256xf32>
    %c18 = arith.constant 18 : index
    %311 = memref.load %arg2[%c18] : memref<98xf32, #tpu.memory_space<smem>>
    %312 = vector.broadcast %311 : f32 to vector<1x256xf32>
    %313 = arith.mulf %29, %312 : vector<1x256xf32>
    %c67 = arith.constant 67 : index
    %314 = memref.load %arg2[%c67] : memref<98xf32, #tpu.memory_space<smem>>
    %315 = vector.broadcast %314 : f32 to vector<1x256xf32>
    %316 = arith.mulf %31, %315 : vector<1x256xf32>
    %317 = arith.addf %313, %316 : vector<1x256xf32>
    %318 = arith.addf %303, %317 : vector<1x256xf32>
    %c25 = arith.constant 25 : index
    %319 = memref.load %arg2[%c25] : memref<98xf32, #tpu.memory_space<smem>>
    %320 = vector.broadcast %319 : f32 to vector<1x256xf32>
    %321 = arith.mulf %3, %320 : vector<1x256xf32>
    %c74 = arith.constant 74 : index
    %322 = memref.load %arg2[%c74] : memref<98xf32, #tpu.memory_space<smem>>
    %323 = vector.broadcast %322 : f32 to vector<1x256xf32>
    %324 = arith.mulf %4, %323 : vector<1x256xf32>
    %325 = arith.addf %321, %324 : vector<1x256xf32>
    %326 = arith.addf %310, %325 : vector<1x256xf32>
    %c32 = arith.constant 32 : index
    %327 = memref.load %arg2[%c32] : memref<98xf32, #tpu.memory_space<smem>>
    %328 = vector.broadcast %327 : f32 to vector<1x256xf32>
    %329 = arith.mulf %37, %328 : vector<1x256xf32>
    %c81 = arith.constant 81 : index
    %330 = memref.load %arg2[%c81] : memref<98xf32, #tpu.memory_space<smem>>
    %331 = vector.broadcast %330 : f32 to vector<1x256xf32>
    %332 = arith.mulf %39, %331 : vector<1x256xf32>
    %333 = arith.addf %329, %332 : vector<1x256xf32>
    %334 = arith.addf %318, %333 : vector<1x256xf32>
    %c39 = arith.constant 39 : index
    %335 = memref.load %arg2[%c39] : memref<98xf32, #tpu.memory_space<smem>>
    %336 = vector.broadcast %335 : f32 to vector<1x256xf32>
    %337 = arith.mulf %45, %336 : vector<1x256xf32>
    %c88 = arith.constant 88 : index
    %338 = memref.load %arg2[%c88] : memref<98xf32, #tpu.memory_space<smem>>
    %339 = vector.broadcast %338 : f32 to vector<1x256xf32>
    %340 = arith.mulf %47, %339 : vector<1x256xf32>
    %341 = arith.addf %337, %340 : vector<1x256xf32>
    %342 = arith.addf %326, %341 : vector<1x256xf32>
    %c46 = arith.constant 46 : index
    %343 = memref.load %arg2[%c46] : memref<98xf32, #tpu.memory_space<smem>>
    %344 = vector.broadcast %343 : f32 to vector<1x256xf32>
    %345 = arith.mulf %53, %344 : vector<1x256xf32>
    %c95 = arith.constant 95 : index
    %346 = memref.load %arg2[%c95] : memref<98xf32, #tpu.memory_space<smem>>
    %347 = vector.broadcast %346 : f32 to vector<1x256xf32>
    %348 = arith.mulf %55, %347 : vector<1x256xf32>
    %349 = arith.addf %345, %348 : vector<1x256xf32>
    %350 = arith.addf %334, %349 : vector<1x256xf32>
    %351 = arith.addf %350, %342 : vector<1x256xf32>
    %c255_i32 = arith.constant 255 : i32
    %352 = tpu.dynamic_rotate %351 by %c255_i32 dim 1 : vector<1x256xf32>, i32 -> vector<1x256xf32>
    %c15_i32_37 = arith.constant 15 : i32
    %353 = vector.broadcast %c15_i32_37 : i32 to vector<1x256xi32>
    %354 = arith.cmpi slt, %7, %353 : vector<1x256xi32>
    %cst_38 = arith.constant 0.000000e+00 : f32
    %355 = vector.broadcast %cst_38 : f32 to vector<1x256xf32>
    %356 = arith.select %354, %352, %355 : vector<1x256xi1>, vector<1x256xf32>
    %357 = arith.addf %240, %356 : vector<1x256xf32>
    %c5 = arith.constant 5 : index
    %358 = memref.load %arg2[%c5] : memref<98xf32, #tpu.memory_space<smem>>
    %359 = vector.broadcast %358 : f32 to vector<1x256xf32>
    %360 = arith.mulf %13, %359 : vector<1x256xf32>
    %c54 = arith.constant 54 : index
    %361 = memref.load %arg2[%c54] : memref<98xf32, #tpu.memory_space<smem>>
    %362 = vector.broadcast %361 : f32 to vector<1x256xf32>
    %363 = arith.mulf %15, %362 : vector<1x256xf32>
    %364 = arith.addf %360, %363 : vector<1x256xf32>
    %c12 = arith.constant 12 : index
    %365 = memref.load %arg2[%c12] : memref<98xf32, #tpu.memory_space<smem>>
    %366 = vector.broadcast %365 : f32 to vector<1x256xf32>
    %367 = arith.mulf %21, %366 : vector<1x256xf32>
    %c61 = arith.constant 61 : index
    %368 = memref.load %arg2[%c61] : memref<98xf32, #tpu.memory_space<smem>>
    %369 = vector.broadcast %368 : f32 to vector<1x256xf32>
    %370 = arith.mulf %23, %369 : vector<1x256xf32>
    %371 = arith.addf %367, %370 : vector<1x256xf32>
    %c19 = arith.constant 19 : index
    %372 = memref.load %arg2[%c19] : memref<98xf32, #tpu.memory_space<smem>>
    %373 = vector.broadcast %372 : f32 to vector<1x256xf32>
    %374 = arith.mulf %29, %373 : vector<1x256xf32>
    %c68 = arith.constant 68 : index
    %375 = memref.load %arg2[%c68] : memref<98xf32, #tpu.memory_space<smem>>
    %376 = vector.broadcast %375 : f32 to vector<1x256xf32>
    %377 = arith.mulf %31, %376 : vector<1x256xf32>
    %378 = arith.addf %374, %377 : vector<1x256xf32>
    %379 = arith.addf %364, %378 : vector<1x256xf32>
    %c26 = arith.constant 26 : index
    %380 = memref.load %arg2[%c26] : memref<98xf32, #tpu.memory_space<smem>>
    %381 = vector.broadcast %380 : f32 to vector<1x256xf32>
    %382 = arith.mulf %3, %381 : vector<1x256xf32>
    %c75 = arith.constant 75 : index
    %383 = memref.load %arg2[%c75] : memref<98xf32, #tpu.memory_space<smem>>
    %384 = vector.broadcast %383 : f32 to vector<1x256xf32>
    %385 = arith.mulf %4, %384 : vector<1x256xf32>
    %386 = arith.addf %382, %385 : vector<1x256xf32>
    %387 = arith.addf %371, %386 : vector<1x256xf32>
    %c33 = arith.constant 33 : index
    %388 = memref.load %arg2[%c33] : memref<98xf32, #tpu.memory_space<smem>>
    %389 = vector.broadcast %388 : f32 to vector<1x256xf32>
    %390 = arith.mulf %37, %389 : vector<1x256xf32>
    %c82 = arith.constant 82 : index
    %391 = memref.load %arg2[%c82] : memref<98xf32, #tpu.memory_space<smem>>
    %392 = vector.broadcast %391 : f32 to vector<1x256xf32>
    %393 = arith.mulf %39, %392 : vector<1x256xf32>
    %394 = arith.addf %390, %393 : vector<1x256xf32>
    %395 = arith.addf %379, %394 : vector<1x256xf32>
    %c40 = arith.constant 40 : index
    %396 = memref.load %arg2[%c40] : memref<98xf32, #tpu.memory_space<smem>>
    %397 = vector.broadcast %396 : f32 to vector<1x256xf32>
    %398 = arith.mulf %45, %397 : vector<1x256xf32>
    %c89 = arith.constant 89 : index
    %399 = memref.load %arg2[%c89] : memref<98xf32, #tpu.memory_space<smem>>
    %400 = vector.broadcast %399 : f32 to vector<1x256xf32>
    %401 = arith.mulf %47, %400 : vector<1x256xf32>
    %402 = arith.addf %398, %401 : vector<1x256xf32>
    %403 = arith.addf %387, %402 : vector<1x256xf32>
    %c47 = arith.constant 47 : index
    %404 = memref.load %arg2[%c47] : memref<98xf32, #tpu.memory_space<smem>>
    %405 = vector.broadcast %404 : f32 to vector<1x256xf32>
    %406 = arith.mulf %53, %405 : vector<1x256xf32>
    %c96 = arith.constant 96 : index
    %407 = memref.load %arg2[%c96] : memref<98xf32, #tpu.memory_space<smem>>
    %408 = vector.broadcast %407 : f32 to vector<1x256xf32>
    %409 = arith.mulf %55, %408 : vector<1x256xf32>
    %410 = arith.addf %406, %409 : vector<1x256xf32>
    %411 = arith.addf %395, %410 : vector<1x256xf32>
    %412 = arith.addf %411, %403 : vector<1x256xf32>
    %c254_i32 = arith.constant 254 : i32
    %413 = tpu.dynamic_rotate %412 by %c254_i32 dim 1 : vector<1x256xf32>, i32 -> vector<1x256xf32>
    %c14_i32 = arith.constant 14 : i32
    %414 = vector.broadcast %c14_i32 : i32 to vector<1x256xi32>
    %415 = arith.cmpi slt, %7, %414 : vector<1x256xi32>
    %cst_39 = arith.constant 0.000000e+00 : f32
    %416 = vector.broadcast %cst_39 : f32 to vector<1x256xf32>
    %417 = arith.select %415, %413, %416 : vector<1x256xi1>, vector<1x256xf32>
    %418 = arith.addf %296, %417 : vector<1x256xf32>
    %c6 = arith.constant 6 : index
    %419 = memref.load %arg2[%c6] : memref<98xf32, #tpu.memory_space<smem>>
    %420 = vector.broadcast %419 : f32 to vector<1x256xf32>
    %421 = arith.mulf %13, %420 : vector<1x256xf32>
    %c55 = arith.constant 55 : index
    %422 = memref.load %arg2[%c55] : memref<98xf32, #tpu.memory_space<smem>>
    %423 = vector.broadcast %422 : f32 to vector<1x256xf32>
    %424 = arith.mulf %15, %423 : vector<1x256xf32>
    %425 = arith.addf %421, %424 : vector<1x256xf32>
    %c13 = arith.constant 13 : index
    %426 = memref.load %arg2[%c13] : memref<98xf32, #tpu.memory_space<smem>>
    %427 = vector.broadcast %426 : f32 to vector<1x256xf32>
    %428 = arith.mulf %21, %427 : vector<1x256xf32>
    %c62 = arith.constant 62 : index
    %429 = memref.load %arg2[%c62] : memref<98xf32, #tpu.memory_space<smem>>
    %430 = vector.broadcast %429 : f32 to vector<1x256xf32>
    %431 = arith.mulf %23, %430 : vector<1x256xf32>
    %432 = arith.addf %428, %431 : vector<1x256xf32>
    %c20 = arith.constant 20 : index
    %433 = memref.load %arg2[%c20] : memref<98xf32, #tpu.memory_space<smem>>
    %434 = vector.broadcast %433 : f32 to vector<1x256xf32>
    %435 = arith.mulf %29, %434 : vector<1x256xf32>
    %c69 = arith.constant 69 : index
    %436 = memref.load %arg2[%c69] : memref<98xf32, #tpu.memory_space<smem>>
    %437 = vector.broadcast %436 : f32 to vector<1x256xf32>
    %438 = arith.mulf %31, %437 : vector<1x256xf32>
    %439 = arith.addf %435, %438 : vector<1x256xf32>
    %440 = arith.addf %425, %439 : vector<1x256xf32>
    %c27 = arith.constant 27 : index
    %441 = memref.load %arg2[%c27] : memref<98xf32, #tpu.memory_space<smem>>
    %442 = vector.broadcast %441 : f32 to vector<1x256xf32>
    %443 = arith.mulf %3, %442 : vector<1x256xf32>
    %c76 = arith.constant 76 : index
    %444 = memref.load %arg2[%c76] : memref<98xf32, #tpu.memory_space<smem>>
    %445 = vector.broadcast %444 : f32 to vector<1x256xf32>
    %446 = arith.mulf %4, %445 : vector<1x256xf32>
    %447 = arith.addf %443, %446 : vector<1x256xf32>
    %448 = arith.addf %432, %447 : vector<1x256xf32>
    %c34 = arith.constant 34 : index
    %449 = memref.load %arg2[%c34] : memref<98xf32, #tpu.memory_space<smem>>
    %450 = vector.broadcast %449 : f32 to vector<1x256xf32>
    %451 = arith.mulf %37, %450 : vector<1x256xf32>
    %c83 = arith.constant 83 : index
    %452 = memref.load %arg2[%c83] : memref<98xf32, #tpu.memory_space<smem>>
    %453 = vector.broadcast %452 : f32 to vector<1x256xf32>
    %454 = arith.mulf %39, %453 : vector<1x256xf32>
    %455 = arith.addf %451, %454 : vector<1x256xf32>
    %456 = arith.addf %440, %455 : vector<1x256xf32>
    %c41 = arith.constant 41 : index
    %457 = memref.load %arg2[%c41] : memref<98xf32, #tpu.memory_space<smem>>
    %458 = vector.broadcast %457 : f32 to vector<1x256xf32>
    %459 = arith.mulf %45, %458 : vector<1x256xf32>
    %c90 = arith.constant 90 : index
    %460 = memref.load %arg2[%c90] : memref<98xf32, #tpu.memory_space<smem>>
    %461 = vector.broadcast %460 : f32 to vector<1x256xf32>
    %462 = arith.mulf %47, %461 : vector<1x256xf32>
    %463 = arith.addf %459, %462 : vector<1x256xf32>
    %464 = arith.addf %448, %463 : vector<1x256xf32>
    %c48 = arith.constant 48 : index
    %465 = memref.load %arg2[%c48] : memref<98xf32, #tpu.memory_space<smem>>
    %466 = vector.broadcast %465 : f32 to vector<1x256xf32>
    %467 = arith.mulf %53, %466 : vector<1x256xf32>
    %c97 = arith.constant 97 : index
    %468 = memref.load %arg2[%c97] : memref<98xf32, #tpu.memory_space<smem>>
    %469 = vector.broadcast %468 : f32 to vector<1x256xf32>
    %470 = arith.mulf %55, %469 : vector<1x256xf32>
    %471 = arith.addf %467, %470 : vector<1x256xf32>
    %472 = arith.addf %456, %471 : vector<1x256xf32>
    %473 = arith.addf %472, %464 : vector<1x256xf32>
    %c253_i32 = arith.constant 253 : i32
    %474 = tpu.dynamic_rotate %473 by %c253_i32 dim 1 : vector<1x256xf32>, i32 -> vector<1x256xf32>
    %c13_i32 = arith.constant 13 : i32
    %475 = vector.broadcast %c13_i32 : i32 to vector<1x256xi32>
    %476 = arith.cmpi slt, %7, %475 : vector<1x256xi32>
    %cst_40 = arith.constant 0.000000e+00 : f32
    %477 = vector.broadcast %cst_40 : f32 to vector<1x256xf32>
    %478 = arith.select %476, %474, %477 : vector<1x256xi1>, vector<1x256xf32>
    %479 = arith.addf %357, %478 : vector<1x256xf32>
    %480 = arith.addf %479, %418 : vector<1x256xf32>
    %cst_41 = arith.constant 0.000000e+00 : f32
    %481 = vector.broadcast %cst_41 : f32 to vector<1x256xf32>
    %482 = arith.subf %481, %480 : vector<1x256xf32>
    %483 = math.exp %482 : vector<1x256xf32>
    %cst_42 = arith.constant 1.000000e+00 : f32
    %484 = vector.broadcast %cst_42 : f32 to vector<1x256xf32>
    %485 = arith.addf %484, %483 : vector<1x256xf32>
    %486 = tpu.reciprocal %485 {approx = true} : vector<1x256xf32> -> vector<1x256xf32>
    %c0_43 = arith.constant 0 : index
    %c0_44 = arith.constant 0 : index
    %c0_45 = arith.constant 0 : index
    %487 = vector.load %arg3[%c0_43, %c0_44, %c0_45] : memref<1x1x256xf32, #tpu.memory_space<vmem>>, vector<1x1x256xf32>
    %488 = vector.shape_cast %487 : vector<1x1x256xf32> to vector<1x256xf32>
    %489 = vector.shape_cast %486 : vector<1x256xf32> to vector<1x1x256xf32>
    tpu.vector_store %arg3[%c0_43, %c0_44, %c0_45], %489 {strides = array<i32>} : memref<1x1x256xf32, #tpu.memory_space<vmem>>, vector<1x1x256xf32>,
    return
  }
  func.func @transform_0(%arg0: i32) -> (i32, i32, i32) {
    %c0_i32 = arith.constant 0 : i32
    %c0_i32_0 = arith.constant 0 : i32
    %c0_i32_1 = arith.constant 0 : i32
    return %arg0, %c0_i32, %c0_i32_0 : i32, i32, i32
  }
  func.func @transform_1(%arg0: i32) -> i32 {
    %c0_i32 = arith.constant 0 : i32
    %c0_i32_0 = arith.constant 0 : i32
    return %c0_i32 : i32
  }
  func.func @transform_2(%arg0: i32) -> (i32, i32, i32) {
    %c0_i32 = arith.constant 0 : i32
    %c0_i32_0 = arith.constant 0 : i32
    %c0_i32_1 = arith.constant 0 : i32
    return %arg0, %c0_i32, %c0_i32_0 : i32, i32, i32
  }
}

</mosaic_0001>

<bundles_post_ra>
// kernel: tpu_custom_call.1
= control target key start
LH: loop header
LB: loop body
LE: loop exit
PB: predicated region body
PF: predicated region fallthrough
CT: control target
= control target key end

     0   :  { %s2704_s0 = inlined_call_operand.hbm [shape: f32[2,4,256], index: 0, kind: input, shape index: {}]   ;;  %s2705_s1 = inlined_call_operand.hbm [shape: f32[98], index: 1, kind: input, shape index: {}]   ;;  %s2706_s2 = inlined_call_operand.hbm [shape: f32[2,1,256], index: 2, kind: output, shape index: {}]  }
   0x1   :  { %2815 = sst [smem:[#allocation65_spill]] %s2704_s0 }
   0x2   :  { %2816 = sst [smem:[#allocation66_spill]] %s2705_s1 }
   0x3   :  { %2817 = sst [smem:[#allocation67_spill]] %s2706_s2 }
   0x4   :  { %7 = vsyncpa [#allocation3], 0 }
   0x5   :  { %9 = vsyncpa [#allocation3 + $0x1], 0 }
   0x6   :  { %10 = vsyncpa [#allocation5], 0 }
   0x7   :  { %11 = vsyncpa [#allocation4], 0 }
   0x8   :  { %13 = vsyncpa [#allocation4 + $0x1], 0  ;;  %s1459_s9 = smov 0   ;;  %s1461_s10 = smov 0  }
   0x9   :  { %s1463_s11 = smov 0   ;;  %s1465_s12 = smov 0  }
   0xa LB: > { %2818 = sst [smem:[#allocation11_spill]] %s1416_s9  ;;  %s1480_s13 = sadd.s32 4294967295, %s1428_s12   ;;  %s1428_s12 = sphi %s1465_s12, %s3029_s12   ;;  %s1424_s11 = sphi %s1463_s11, %s3032_s11   ;;  %s1420_s10 = sphi %s1461_s10, %s3031_s10   ;;  %s1416_s9 = sphi %s1459_s9, %s3030_s9  }
   0xb   : > { %2819 = sst [smem:[#allocation12_spill]] %s1420_s10  ;;  %s1120_s14 = sadd.s32 4294967294, %s1428_s12  }
   0xc   : > { %2820 = sst [smem:[#allocation13_spill]] %s1424_s11  ;;  %p39_p0 = scmp.ne.s32.totalorder %s1420_s10, %s1416_s9 }
   0xd   : > { %2821 = sst [smem:[#allocation14_spill]] %s1428_s12  ;;  %p40_p1 = scmp.eq.s32.totalorder %s1480_s13, 0 }
   0xe   : > { %2822 = sst [smem:[#allocation15_spill]] %s1480_s13  ;;  %p84_p2 = scmp.eq.s32.totalorder %s1480_s13, 1 }
   0xf   : > { %p90_p3 = scmp.eq.s32.totalorder %s1120_s14, 1  ;;  %p1489_p4 = por %p40_p1, %p39_p0 }
  0x10   : > { %p1121_p5 = scmp.ge.s32.totalorder %s1428_s12, 1  ;;  %p97_p7 = scmp.lt.s32.totalorder %s1428_s12, 3 }
  0x11   : > { %p1494_p6 = por %p90_p3, %p39_p0  ;;  %s2826_s1 = sld [smem:[#allocation66_spill]] }
  0x12   : > { %p1502_p8 = pnand %p1121_p5, %p97_p7  ;;  %s1510_s21 = sadd.s32 1, %s1428_s12  }
  0x13   : > { %s2824_s16 = scalar_select %p1494_p6, 1, 0 }
  0x14   : > { %p1241_p10 = pneg %p1502_p8  ;;  %2828 = sst [smem:[#allocation17_spill]] %s1510_s21 }
  0x15   : > { %2825 = sst [smem:[#allocation16_spill]] %s2824_s16  ;;  %s23_s22 = ssub.s32 %s1428_s12, %s1510_s21 }
  0x16   : > { %p1242_p11 = pnand %p1241_p10, %p40_p1  ;;  %p24_p12 = scmp.eq.s32.totalorder %s23_s22, 0 }
  0x17   : > { %s109_s19 = sshll.u32 %s2826_s1, 4  ;;  %s26_s23 = sadd.s32 1, %s1424_s11  ;;  %s110_s19 = int_to_ptr.hbm [resolvable:$true] %s109_s19 }
  0x18   : > { %p33_p13 = scmp.ne.s32.totalorder %s1424_s11, %s1420_s10  ;;  %s1430_s24 = smov [#allocation6]  }
  0x19   : > { %1244 = dma.hbm_to_smem (!%p1242_p11), %s110_s19, 16, %s1430_s24, [#allocation5]  }
  0x1a   : > { %s1520_s25 = scalar_select %p24_p12, %s1424_s11, %s26_s23  }
  0x1b   : > { %p34_p0 = scmp.eq.s32.totalorder %s1428_s12, 0  ;;  %p1525_p3 = por %p84_p2, %p33_p13 }
  0x1c   : > { %2829 = sst [smem:[#allocation18_spill]] %s1520_s25  ;;  %s120_s27 = sand.u32 1, %s1424_s11  }
  0x1d   : > { %s2830_s26 = scalar_select %p1525_p3, 1, 0 }
  0x1e   : > { %p35_p5 = por %p34_p0, %p33_p13  ;;  %p1254_p7 = scmp.lt.s32.totalorder %s1428_s12, 2 }
  0x1f   : > { %2831 = sst [smem:[#allocation19_spill]] %s2830_s26  ;;  %s1124_s28 = sshll.u32 %s120_s27, 3 }
  0x20   : > { %s1232_s29 = sshll.u32 %s1428_s12, 3  ;;  %s2832_s0 = sld [smem:[#allocation65_spill]] }
  0x21   : > { %s124_s6 = scalar_lea.vmem [#allocation2], %s1124_s28  ;;  %p1535_p10 = pnand %p1254_p7, %p35_p5 }
  0x22   : > { %s133_s7 = sshll.u32 %s124_s6, 4  ;;  %s121_s14 = scalar_lea.sflag [#allocation3], %s120_s27  ;;  %s134_s7 = int_to_ptr.vmem [resolvable:$true] %s133_s7 }
  0x23   : > { %p1332_p11 = pneg %p1535_p10 }
  0x26   : > { %s129_s4 = scalar_lea.hbm %s2832_s0, %s1232_s29  ;;  %s1335_s23 = scalar_lea.hbm %s2832_s0, 16 }
  0x27   : > { %s131_s5 = sshll.u32 %s129_s4, 4  ;;  %s132_s5 = int_to_ptr.hbm [resolvable:$true] %s131_s5 }
  0x28   : > { %s1328_s17 = sshra.s32 %s132_s5, 4  ;;  %s1329_s17 = int_to_ptr.hbm [resolvable:$true] %s1328_s17 }
  0x29   : > { %s1330_s18 = scalar_lea.hbm %s1329_s17, 8  ;;  %p1336_p0 = scmp.lt.s32.totalorder %s1329_s17, %s2832_s0 }
  0x2a   : > { %p1331_p2 = scmp.ne.s32.totalorder %s1329_s17, %s1330_s18  ;;  %p1337_p5 = scmp.lt.s32.totalorder %s1335_s23, %s1330_s18 }
  0x2c   : > { %p1333_p12 = pnand %p1332_p11, %p1331_p2  ;;  %p1338_p7 = por %p1337_p5, %p1336_p0 }
  0x2e   : > { %p1334_p13 = pneg %p1333_p12 }
  0x30   : > { %p1339_p9 = pnand %p1338_p7, %p1334_p13 }
  0x32   : > { %1342 = shalt.err (!%p1339_p9)
}
  0x33   : > { %1248 = dma.hbm_to_vmem [thread:$0]  (!%p1535_p10), %s132_s5, 128, %s134_s7, %s121_s14  }
  0x34   : > { %142 = sbr.rel (%p1502_p8) target bundleno = 482 (0x1e2), region = 28 }
  0x39   : > { %s1552_s27 = sand.u32 1, %s1420_s10  }
  0x3a   : > { %2834 = sst [smem:[#allocation20_spill]] %s1552_s27  ;;  %s1128_s29 = sshll.u32 %s1552_s27, 3 }
  0x3b   : > { %s145_s30 = scalar_lea.sflag [#allocation3], %s1552_s27  ;;  %s148_s3 = scalar_lea.vmem [#allocation2], %s1128_s29 }
  0x3c   : > { %1403 = dma.done.wait (%p1489_p4), %s145_s30, 128  }
  0x3d   : > { %1405 = vsyncadd (%p1489_p4), %s145_s30, 4294967168 }
  0x3e   : > { %1407 = dma.done.wait (%p40_p1), [#allocation5], 16  }
  0x3f   : > { %1409 = vsyncadd (%p40_p1), [#allocation5], 4294967280 }
  0x40   : > { %159 = sfence }
  0x41   : > { %v176_v0 = vld [vmem:[%s148_s3] sm:$0xff]  ;;  %v1431_v1 = vmov 4.0   ;;  %vm183_vm0 = vcmask 1043456   ;;  %s1432_s15 = smov 48   ;;  %s1433_s20 = smov 16   ;;  %v2742_v43 = vlaneseq }
  0x42   : > { %178 = vst [vmem:[#allocation1] ss:$2 sm:$0xff] %v176_v0  ;;  %1303 = vrcp.f32 %v1431_v1  ;;  %s1434_s4 = smov 32   ;;  %s1435_s5 = smov 112  }
  0x43   : > { %s1436_s6 = smov 96   ;;  %s1437_s7 = smov 80   ;;  %v1651_v44 = vand.u32 127, %v2742_v43 }
  0x44   : > { %s1600_s8 = sld [smem:[#allocation6 + $0x10]] }
  0x45   : > { %s1602_s14 = sld [smem:[#allocation6 + $0x2]]  ;;  %2851 = vst [vmem:[#allocation37_spill] sm:$0xff] %v1651_v44  ;;  %vm273_vm2 = vcmp.lt.s32.totalorder %v1651_v44, 16  ;;  %vm282_vm3 = vcmp.ge.s32.totalorder %v1651_v44, 16  ;;  %vm235_vm4 = vcmp.lt.s32.totalorder %v1651_v44, 48  ;;  %vm244_vm5 = vcmp.ge.s32.totalorder %v1651_v44, 48 }
  0x46   : > { %s1604_s17 = sld [smem:[#allocation6 + $0x1]]  ;;  %vm254_vm6 = vcmp.lt.s32.totalorder %v1651_v44, 32  ;;  %vm263_vm7 = vcmp.ge.s32.totalorder %v1651_v44, 32  ;;  %vm292_vm8 = vcmp.lt.s32.totalorder %v1651_v44, 112  ;;  %vm311_vm10 = vcmp.lt.s32.totalorder %v1651_v44, 96 }
  0x47   : > { %s1606_s18 = sld [smem:[#allocation6 + $0xf]]  ;;  %vm330_vm12 = vcmp.lt.s32.totalorder %v1651_v44, 80 }
  0x48   : > { %v1304_v2 = vpop.eup %1303  ;;  %s1608_s19 = sld [smem:[#allocation6]] }
  0x49   : > { %v179_v3 = vld.sshfl [vmem:[#allocation1] sm:$0xff pattern:$0x75316420]  ;;  %v180_v4 = vld.sshfl [vmem:[#allocation1 + $0x8] sm:$0xff pattern:$0x75316420]  ;;  %vm203_vm1 = vweird.f32 %v1304_v2 }
  0x4a   : > { %v184_v5 = vsel %vm183_vm0, %v179_v3, 0.0  ;;  %v199_v6 = vmul.f32 4.0, %v1304_v2  ;;  %207 = vst [vmem:[#allocation1] ss:$2 sm:$0xff] %v176_v0  ;;  %v191_v7 = vsel %vm183_vm0, %v180_v4, 0.0  ;;  %s1610_s22 = sld [smem:[#allocation6 + $0x33]]  ;;  %v556_v47 = vstv %s1600_s8 }
  0x4b   : > { %v185_v8 = vrot.slane %v184_v5, 4  ;;  %v192_v9 = vrot.slane %v191_v7, 4  ;;  %s1612_s23 = sld [smem:[#allocation6 + $0x32]]  ;;  %v536_v50 = vstv %s1602_s14 }
  0x4c   : > { %v200_v10 = vsub.f32 1.0, %v199_v6  ;;  %2838 = sst [smem:[#allocation24_spill]] %s1604_s17  ;;  %v2757_v51 = vstv %s1604_s17 }
  0x4d   : > { %v186_v11 = vadd.f32 %v185_v8, %v184_v5  ;;  %v193_v12 = vadd.f32 %v192_v9, %v191_v7  ;;  %2839 = sst [smem:[#allocation25_spill]] %s1606_s18  ;;  %v2754_v48 = vstv %s1606_s18 }
  0x4e   : > { %v201_v13 = vmul.f32 %v1304_v2, %v200_v10  ;;  %s1614_s24 = sld [smem:[#allocation6 + $0x31]]  ;;  %v346_v54 = vstv %s1608_s19 }
  0x4f   : > { %v187_v14 = vrot.slane %v186_v11, 2  ;;  %v194_v15 = vrot.slane %v193_v12, 2  ;;  %s1616_s28 = sld [smem:[#allocation6 + $0xe]] }
  0x50   : > { %v202_v16 = vadd.f32 %v1304_v2, %v201_v13  ;;  %s1618_s29 = sld [smem:[#allocation6 + $0x4]]  ;;  %v540_v57 = vstv %s1610_s22 }
  0x51   : > { %v188_v17 = vadd.f32 %v187_v14, %v186_v11  ;;  %v208_v18 = vld.sshfl [vmem:[#allocation1] sm:$0xff pattern:$0x75316420]  ;;  %v195_v19 = vadd.f32 %v194_v15, %v193_v12  ;;  %v209_v20 = vld.sshfl [vmem:[#allocation1 + $0x8] sm:$0xff pattern:$0x75316420]  ;;  %v2759_v58 = vstv %s1612_s23 }
  0x52   : > { %v212_v21 = vsel %vm183_vm0, %v208_v18, -inf  ;;  %v219_v22 = vsel %vm183_vm0, %v209_v20, -inf  ;;  %v204_v26 = vsel %vm203_vm1, %v1304_v2, %v202_v16  ;;  %2840 = sst [smem:[#allocation26_spill]] %s1612_s23 }
  0x53   : > { %v189_v23 = vrot.slane %v188_v17, 1  ;;  %v213_v24 = vrot.slane %v212_v21, 4  ;;  %v220_v25 = vrot.slane %v219_v22, 4  ;;  %v196_v29 = vrot.slane %v195_v19, 1  ;;  %s1620_s30 = sld [smem:[#allocation6 + $0x35]] }
  0x54   : > { %s1622_s3 = sld [smem:[#allocation6 + $0x12]]  ;;  %v350_v59 = vstv %s1614_s24 }
  0x55   : > { %v190_v27 = vadd.f32 %v189_v23, %v188_v17  ;;  %v214_v28 = vmax.f32 %v212_v21, %v213_v24  ;;  %v221_v30 = vmax.f32 %v219_v22, %v220_v25  ;;  %v197_v35 = vadd.f32 %v196_v29, %v195_v19  ;;  %s1636_s0 = sld [smem:[#allocation6 + $0xb]] }
  0x56   : > { %2841 = sst [smem:[#allocation27_spill]] %s1618_s29  ;;  %v366_v52 = vstv %s1616_s28  ;;  %v2758_v55 = vstv %s1618_s29 }
  0x57   : > { %v1568_v31 = vmul.f32 %v204_v26, %v190_v27  ;;  %v215_v32 = vrot.slane %v214_v28, 2  ;;  %v222_v33 = vrot.slane %v221_v30, 2  ;;  %v1574_v39 = vmul.f32 %v204_v26, %v197_v35  ;;  %s1638_s1 = sld [smem:[#allocation6 + $0x3a]] }
  0x58   : > { %s1640_s25 = sld [smem:[#allocation6 + $0x17]] }
  0x59   : > { %231 = vrot.lane.b32.xlu0 %v1568_v31, %s1432_s15  ;;  %v216_v34 = vmax.f32 %v214_v28, %v215_v32  ;;  %269 = vrot.lane.b32.xlu2 %v1568_v31, %s1433_s20  ;;  %v223_v37 = vmax.f32 %v221_v30, %v222_v33  ;;  %2836 = vst [vmem:[#allocation22_spill] sm:$0xff] %v1574_v39  ;;  %2842 = sst [smem:[#allocation28_spill]] %s1620_s30  ;;  %v2765_v2 = vstv %s1620_s30 }
  0x5a   : > { %2843 = sst [smem:[#allocation29_spill]] %s1622_s3  ;;  %v2751_v56 = vstv %s1622_s3 }
  0x5b   : > { %v217_v36 = vrot.slane %v216_v34, 1  ;;  %v224_v40 = vrot.slane %v223_v37, 1  ;;  %2846 = sst [smem:[#allocation32_spill]] %s1636_s0  ;;  %v2766_v29 = vstv %s1636_s0 }
  0x5c   : > { %s1642_s11 = sld [smem:[#allocation6 + $0x48]] }
  0x5d   : > { %v1572_v38 = vmax.f32 %v216_v34, %v217_v36  ;;  %v1579_v41 = vmax.f32 %v223_v37, %v224_v40  ;;  %2847 = sst [smem:[#allocation33_spill]] %s1638_s1  ;;  %v550_v32 = vstv %s1638_s1  ;;  %v1792_v37 = vadd.s32 128, %v1651_v44 }
  0x5e   : > { %s1644_s10 = sld [smem:[#allocation6 + $0x39]]  ;;  %v568_v7 = vstv %s1640_s25 }
  0x5f   : > { %2835 = vst [vmem:[#allocation21_spill] sm:$0xff] %v1572_v38  ;;  %238 = vrot.lane.b32.xlu1 %v1572_v38, %s1432_s15  ;;  %s1646_s21 = sld [smem:[#allocation6 + $0x16]]  ;;  %v570_v18 = vmul.f32 %v568_v7, %v1574_v39  ;;  %vm302_vm9 = vcmp.lt.s32.totalorder %v1792_v37, 240  ;;  %vm321_vm11 = vcmp.lt.s32.totalorder %v1792_v37, 224  ;;  %vm340_vm13 = vcmp.lt.s32.totalorder %v1792_v37, 208 }
  0x60   : > { %2837 = vst [vmem:[#allocation23_spill] sm:$0xff] %v1579_v41  ;;  %s1648_s12 = sld [smem:[#allocation6 + $0x47]] }
  0x61   : > { %233 = vrot.lane.b32.xlu0 %v1574_v39, %s1432_s15  ;;  %271 = vrot.lane.b32.xlu2 %v1574_v39, %s1433_s20  ;;  %s1653_s16 = sld [smem:[#allocation6 + $0x38]]  ;;  %2870 = vst [vmem:[#allocation54_spill] sm:$0xff] %v1792_v37 }
  0x62   : > { %s1655_s9 = sld [smem:[#allocation6 + $0x15]]  ;;  %v572_v8 = vstv %s1642_s11 }
  0x63   : > { %s1657_s26 = sld [smem:[#allocation6 + $0x1e]]  ;;  %v574_v19 = vmul.f32 %v572_v8, %v1579_v41 }
  0x64   : > { %2848 = sst [smem:[#allocation34_spill]] %s1644_s10 }
  0x65   : > { %2849 = sst [smem:[#allocation35_spill]] %s1646_s21  ;;  %v2753_v11 = vstv %s1646_s21  ;;  %v1794_v40 = vadd.f32 %v574_v19, %v570_v18 }
  0x66   : > { %2850 = sst [smem:[#allocation36_spill]] %s1648_s12  ;;  %v2752_v12 = vstv %s1648_s12  ;;  %v475_v23 = vmul.f32 %v2753_v11, %v1574_v39 }
  0x67   : > { %240 = vrot.lane.b32.xlu1 %v1579_v41, %s1432_s15  ;;  %s1624_s15 = sld [smem:[#allocation6 + $0x9]]  ;;  %v479_v24 = vmul.f32 %v2752_v12, %v1579_v41 }
  0x68   : > { %2852 = sst [smem:[#allocation38_spill]] %s1653_s16  ;;  %v378_v16 = vstv %s1655_s9 }
  0x69   : > { %252 = vrot.lane.b32.xlu0 %v1574_v39, %s1434_s4  ;;  %250 = vrot.lane.b32.xlu2 %v1568_v31, %s1434_s4  ;;  %2853 = sst [smem:[#allocation39_spill]] %s1657_s26  ;;  %v380_v27 = vmul.f32 %v378_v16, %v1574_v39 }
  0x6a   : > { %s1659_s2 = sld [smem:[#allocation6 + $0x13]] }
  0x6b   : > { %s1662_s13 = sld [smem:[#allocation6 + $0x5]] }
  0x6c   : > { %s1664_s27 = sld [smem:[#allocation6 + $0x1d]] }
  0x6d   : > { %s1666_s10 = sld [smem:[#allocation6 + $0x46]]  ;;  %v546_v6 = vstv %s1624_s15 }
  0x6e   : > { %s1671_s26 = sld [smem:[#allocation6 + $0x36]] }
  0x6f   : > { %278 = vrot.lane.b32.xlu1 %v1579_v41, %s1433_s20  ;;  %s1675_s16 = sld [smem:[#allocation6 + $0x19]] }
  0x70   : > { %2854 = sst [smem:[#allocation40_spill]] %s1659_s2  ;;  %v2743_v60 = vstv %s1659_s2 }
  0x71   : > { %276 = vrot.lane.b32.xlu0 %v1572_v38, %s1433_s20  ;;  %259 = vrot.lane.b32.xlu2 %v1579_v41, %s1434_s4  ;;  %s1626_s20 = sld [smem:[#allocation6 + $0x8]]  ;;  %v2762_v0 = vstv %s1662_s13 }
  0x72   : > { %2855 = sst [smem:[#allocation41_spill]] %s1662_s13 }
  0x73   : > { %2856 = sst [smem:[#allocation42_spill]] %s1664_s27  ;;  %v382_v17 = vstv %s1666_s10 }
  0x74   : > { %2857 = sst [smem:[#allocation43_spill]] %s1671_s26  ;;  %v2769_v13 = vstv %s1671_s26  ;;  %v384_v28 = vmul.f32 %v382_v17, %v1579_v41 }
  0x75   : > { %2858 = sst [smem:[#allocation44_spill]] %s1675_s16  ;;  %v2745_v20 = vstv %s1675_s16 }
  0x76   : > { %s1684_s27 = sld [smem:[#allocation6 + $0x4a]]  ;;  %v749_v34 = vmul.f32 %v2745_v20, %v1574_v39  ;;  %v1811_v43 = vadd.f32 %v384_v28, %v380_v27 }
  0x77   : > { %257 = vrot.lane.b32.xlu1 %v1572_v38, %s1434_s4  ;;  %2844 = sst [smem:[#allocation30_spill]] %s1626_s20  ;;  %v2767_v10 = vstv %s1626_s20 }
  0x78   : > { %s1628_s4 = sld [smem:[#allocation6 + $0x41]] }
  0x79   : > { %288 = vrot.lane.b32.xlu0 %v1568_v31, %s1435_s5  ;;  %295 = vrot.lane.b32.xlu2 %v1572_v38, %s1435_s5  ;;  %s1690_s8 = sld [smem:[#allocation6 + $0x4f]] }
  0x7a   : > { %s1699_s28 = sld [smem:[#allocation6 + $0x43]] }
  0x7b   : > { %s1710_s29 = sld [smem:[#allocation6 + $0x4e]] }
  0x7c   : > { %2860 = sst [smem:[#allocation46_spill]] %s1684_s27  ;;  %v2744_v21 = vstv %s1684_s27 }
  0x7d   : > { %s1729_s18 = sld [smem:[#allocation6 + $0xc]]  ;;  %v753_v35 = vmul.f32 %v2744_v21, %v1579_v41  ;;  %v573_v21 = vmul.f32 %v572_v8, %v1572_v38 }
  0x7e   : > { %2845 = sst [smem:[#allocation31_spill]] %s1628_s4  ;;  %v560_v14 = vstv %s1628_s4 }
  0x7f   : > { %290 = vrot.lane.b32.xlu1 %v1574_v39, %s1435_s5  ;;  %s1734_s30 = sld [smem:[#allocation6 + $0x3c]] }
  0x80   : > { %2861 = sst [smem:[#allocation47_spill]] %s1699_s28  ;;  %v2774_v30 = vstv %s1699_s28 }
  0x81   : > { %297 = vrot.lane.b32.xlu0 %v1579_v41, %s1435_s5  ;;  %309 = vrot.lane.b32.xlu2 %v1574_v39, %s1436_s6  ;;  %s1630_s5 = sld [smem:[#allocation6 + $0x40]] }
  0x82   : > { %2862 = sst [smem:[#allocation48_spill]] %s1710_s29 }
  0x83   : > { %2863 = sst [smem:[#allocation49_spill]] %s1729_s18 }
  0x84   : > { %s1745_s3 = sld [smem:[#allocation6 + $0x44]] }
  0x85   : > { %2864 = sst [smem:[#allocation50_spill]] %s1734_s30 }
  0x86   : > { %s1751_s11 = sld [smem:[#allocation6 + $0x1c]] }
  0x87   : > { %307 = vrot.lane.b32.xlu1 %v1568_v31, %s1436_s6  ;;  %s2866_s25 = sld [smem:[#allocation34_spill]]  ;;  %v2778_v22 = vstv %s1630_s5 }
  0x88   : > { %s1757_s2 = sld [smem:[#allocation6 + $0x3d]] }
  0x89   : > { %314 = vrot.lane.b32.xlu0 %v1572_v38, %s1436_s6  ;;  %326 = vrot.lane.b32.xlu2 %v1568_v31, %s1437_s7  ;;  %s1767_s4 = sld [smem:[#allocation6 + $0x4d]] }
  0x8a   : > { %2865 = sst [smem:[#allocation51_spill]] %s1745_s3  ;;  %v2777_v20 = vstv %s1745_s3 }
  0x8b   : > { %s1778_s21 = sld [smem:[#allocation6 + $0x20]] }
  0x8c   : > { %s1788_s12 = sld [smem:[#allocation6 + $0x51]] }
  0x8d   : > { %v2779_v33 = vstv %s2866_s25  ;;  %s1796_s28 = sld [smem:[#allocation6 + $0x25]] }
  0x8e   : > { %2867 = sst [smem:[#allocation52_spill]] %s1757_s2 }
  0x8f   : > { %316 = vrot.lane.b32.xlu1 %v1579_v41, %s1436_s6  ;;  %s1632_s6 = sld [smem:[#allocation6 + $0x7]] }
  0x90   : > { %s2872_s25 = sld [smem:[#allocation42_spill]] }
  0x91   : > { %328 = vrot.lane.b32.xlu0 %v1574_v39, %s1437_s7  ;;  %335 = vrot.lane.b32.xlu2 %v1579_v41, %s1437_s7  ;;  %s1808_s27 = sld [smem:[#allocation6 + $0x24]] }
  0x92   : > { %2869 = sst [smem:[#allocation53_spill]] %s1788_s12 }
  0x93   : > { %s1816_s26 = sld [smem:[#allocation6 + $0x1a]] }
  0x94   : > { %s1824_s30 = sld [smem:[#allocation6 + $0x23]] }
  0x95   : > { %v356_v15 = vstv %s1632_s6  ;;  %s1832_s3 = sld [smem:[#allocation6 + $0x56]] }
  0x96   : > { %s1839_s1 = sld [smem:[#allocation6 + $0x55]] }
  0x97   : > { %333 = vrot.lane.b32.xlu1 %v1572_v38, %s1437_s7  ;;  %s1634_s7 = sld [smem:[#allocation6 + $0x3f]] }
  0x98   : > { %s1850_s29 = sld [smem:[#allocation6 + $0x27]] }
  0x99   : > { %2875 = sst [smem:[#allocation42_spill]] %s1816_s26 }
  0x9a   : > { %s1863_s16 = sld [smem:[#allocation6 + $0x2c]] }
  0x9b   : > { %s1875_s14 = sld [smem:[#allocation6 + $0x2b]] }
  0x9c   : > { %s1896_s9 = sld [smem:[#allocation6 + $0x4b]] }
  0x9d   : > { %v370_v25 = vstv %s1634_s7  ;;  %s1900_s10 = sld [smem:[#allocation6 + $0x54]] }
  0x9e   : > { %s1915_s23 = sld [smem:[#allocation6 + $0x2a]] }
  0x9f   : > { %s1927_s17 = sld [smem:[#allocation6 + $0x58]] }
  0xa0   : > { %s1943_s20 = sld [smem:[#allocation6 + $0x2e]] }
  0xa1   : > { %2877 = sst [smem:[#allocation57_spill]] %s1875_s14 }
  0xa2   : > { %2880 = sst [smem:[#allocation59_spill]] %s1896_s9 }
  0xa3   : > { %s1948_s22 = sld [smem:[#allocation6 + $0x5d]] }
  0xa4   : > { %s1964_s24 = sld [smem:[#allocation6 + $0x5c]] }
  0xa5   : > { %s2004_s6 = sld [smem:[#allocation6 + $0x5b]]  ;;  %v2940_v41 = vstv %s1927_s17 }
  0xa6   : > { %s2887_s15 = sld [smem:[#allocation34_spill]] }
  0xa7   : > { %s2888_s19 = sld [smem:[#allocation38_spill]] }
  0xa8   : > { %s2889_s14 = sld [smem:[#allocation50_spill]] }
  0xa9   : > { %s2046_s0 = sld [smem:[#allocation6 + $0x21]] }
  0xaa   : > { %s2895_s13 = sld [smem:[#allocation39_spill]] }
  0xab   : > { %s2899_s7 = sld [smem:[#allocation48_spill]] }
  0xaf   : > { %2891 = sst [smem:[#allocation31_spill]] %s2046_s0 }
  0xb3   : > { %v270_v42 = vpop.permute.xlu2 %269 }
  0xbb   : > { %v272_v45 = vpop.permute.xlu2 %271 }
  0xbc   : > { %v275_v46 = vsel %vm273_vm2, %v272_v45, %v270_v42  ;;  %v1679_v49 = vsel %vm273_vm2, %v270_v42, %v272_v45  ;;  %v2773_v45 = vstv %s1729_s18  ;;  %s2920_s18 = sld [smem:[#allocation30_spill]] }
  0xbd   : > { %2859 = vst [vmem:[#allocation45_spill] sm:$0xff] %v1679_v49  ;;  %v1688_v53 = vsel %vm282_vm3, %v275_v46, 0.0  ;;  %v1703_v61 = vmul.f32 %v556_v47, %v1679_v49  ;;  %v1708_v62 = vmul.f32 %v2754_v48, %v1679_v49  ;;  %v1713_v63 = vmul.f32 %v366_v52, %v1679_v49 }
  0xbe   : > { %v1721_v3 = vmul.f32 %v2751_v56, %v1679_v49  ;;  %v1724_v4 = vmul.f32 %v556_v47, %v1688_v53  ;;  %v1727_v5 = vmul.f32 %v366_v52, %v1688_v53  ;;  %v1739_v9 = vmul.f32 %v2743_v60, %v1688_v53 }
  0xbf   : > { %v1806_v52 = vadd.f32 %v479_v24, %v475_v23  ;;  %v569_v60 = vmul.f32 %v568_v7, %v1568_v31  ;;  %v1826_v7 = vadd.f32 %v753_v35, %v749_v34  ;;  %v2770_v35 = vstv %s1816_s26  ;;  %s2014_s26 = sld [smem:[#allocation6 + $0x5f]] }
  0xc1   : > { %v1855_v28 = vadd.f32 %v573_v21, %v569_v60 }
  0xc3   : > { %v251_v19 = vpop.permute.xlu2 %250 }
  0xcb   : > { %v232_v1 = vpop.permute.xlu0 %231 }
  0xd1   : > { %v239_v26 = vpop.permute.xlu1 %238 }
  0xd3   : > { %v234_v36 = vpop.permute.xlu0 %233 }
  0xd4   : > { %v1802_v46 = vsel %vm235_vm4, %v232_v1, %v234_v36  ;;  %v237_v47 = vsel %vm235_vm4, %v234_v36, %v232_v1 }
  0xd5   : > { %2873 = vst [vmem:[#allocation55_spill] sm:$0xff] %v1802_v46  ;;  %v1820_v1 = vsel %vm244_vm5, %v237_v47, 0.0  ;;  %v538_v8 = vmul.f32 %v536_v50, %v1802_v46  ;;  %v443_v47 = vmul.f32 %v2757_v51, %v1802_v46  ;;  %v348_v34 = vmul.f32 %v346_v54, %v1802_v46 }
  0xd6   : > { %v717_v56 = vmul.f32 %v2758_v55, %v1802_v46  ;;  %v537_v51 = vmul.f32 %v536_v50, %v1820_v1  ;;  %v347_v48 = vmul.f32 %v346_v54, %v1820_v1 }
  0xd9   : > { %v241_v12 = vpop.permute.xlu1 %240 }
  0xda   : > { %v1859_v27 = vsel %vm235_vm4, %v239_v26, %v241_v12  ;;  %v243_v55 = vsel %vm235_vm4, %v241_v12, %v239_v26  ;;  %v379_v12 = vmul.f32 %v378_v16, %v1568_v31  ;;  %v383_v26 = vmul.f32 %v382_v17, %v1572_v38  ;;  %v260_v16 = vpop.permute.xlu2 %259 }
  0xdb   : > { %2876 = vst [vmem:[#allocation56_spill] sm:$0xff] %v1859_v27  ;;  %v253_v50 = vpop.permute.xlu0 %252  ;;  %v542_v60 = vmul.f32 %v540_v57, %v1859_v27  ;;  %v447_v21 = vmul.f32 %v2759_v58, %v1859_v27  ;;  %v1885_v54 = vsel %vm244_vm5, %v243_v55, 0.0  ;;  %v352_v24 = vmul.f32 %v350_v59, %v1859_v27 }
  0xdc   : > { %v1889_v11 = vsel %vm254_vm6, %v251_v19, %v253_v50  ;;  %v256_v58 = vsel %vm254_vm6, %v253_v50, %v251_v19  ;;  %v811_v55 = vmul.f32 %v2762_v0, %v1820_v1 }
  0xdd   : > { %2878 = vst [vmem:[#allocation58_spill] sm:$0xff] %v1889_v11  ;;  %v1908_v19 = vsel %vm263_vm7, %v256_v58, 0.0  ;;  %v544_v50 = vadd.f32 %v542_v60, %v538_v8  ;;  %v1913_v23 = vmul.f32 %v546_v6, %v1889_v11  ;;  %v449_v17 = vadd.f32 %v447_v21, %v443_v47 }
  0xde   : > { %v1920_v0 = vmul.f32 %v2767_v10, %v1889_v11  ;;  %v1922_v36 = vadd.f32 %v352_v24, %v348_v34  ;;  %v721_v58 = vmul.f32 %v2765_v2, %v1859_v27  ;;  %v541_v8 = vmul.f32 %v540_v57, %v1885_v54 }
  0xdf   : > { %v1935_v47 = vmul.f32 %v356_v15, %v1889_v11  ;;  %v1941_v21 = vmul.f32 %v2766_v29, %v1889_v11  ;;  %v351_v24 = vmul.f32 %v350_v59, %v1885_v54  ;;  %v1954_v2 = vmul.f32 %v546_v6, %v1908_v19 }
  0xe0   : > { %v1959_v29 = vmul.f32 %v356_v15, %v1908_v19  ;;  %v815_v10 = vmul.f32 %v2769_v13, %v1885_v54  ;;  %v723_v59 = vadd.f32 %v721_v58, %v717_v56  ;;  %v1966_v60 = vadd.f32 %v541_v8, %v537_v51 }
  0xe1   : > { %v279_v34 = vpop.permute.xlu1 %278  ;;  %v1968_v57 = vadd.f32 %v383_v26, %v379_v12  ;;  %v1973_v6 = vmul.f32 %v2773_v45, %v1908_v19  ;;  %v1977_v42 = vadd.f32 %v351_v24, %v347_v48  ;;  %v1982_v56 = vmul.f32 %v2770_v35, %v1568_v31 }
  0xe2   : > { %v1990_v26 = vadd.f32 %v815_v10, %v811_v55  ;;  %v2781_v58 = vstv %s1896_s9  ;;  %s2145_s9 = sld [smem:[#allocation6 + $0x28]]  ;;  %v2943_v27 = vstv %s1915_s23 }
  0xe3   : > { %v277_v15 = vpop.permute.xlu0 %276 }
  0xe4   : > { %v1986_v51 = vsel %vm273_vm2, %v277_v15, %v279_v34  ;;  %v281_v12 = vsel %vm273_vm2, %v279_v34, %v277_v15 }
  0xe5   : > { %2884 = vst [vmem:[#allocation60_spill] sm:$0xff] %v1986_v51  ;;  %v1995_v48 = vsel %vm282_vm3, %v281_v12, 0.0  ;;  %v562_v8 = vmul.f32 %v560_v14, %v1986_v51  ;;  %v467_v35 = vmul.f32 %v2778_v22, %v1986_v51  ;;  %v372_v10 = vmul.f32 %v370_v25, %v1986_v51 }
  0xe6   : > { %v741_v15 = vmul.f32 %v2774_v30, %v1986_v51  ;;  %v561_v18 = vmul.f32 %v560_v14, %v1995_v48 }
  0xe7   : > { %v564_v12 = vadd.f32 %v562_v8, %v1703_v61  ;;  %v469_v45 = vadd.f32 %v467_v35, %v1708_v62  ;;  %v374_v13 = vadd.f32 %v372_v10, %v1713_v63  ;;  %v296_v8 = vpop.permute.xlu2 %295  ;;  %v371_v63 = vmul.f32 %v370_v25, %v1995_v48 }
  0xe8   : > { %v743_v30 = vadd.f32 %v741_v15, %v1721_v3  ;;  %v835_v3 = vmul.f32 %v2777_v20, %v1995_v48  ;;  %v2892_v20 = vstv %s2888_s19 }
  0xe9   : > { %v258_v61 = vpop.permute.xlu1 %257  ;;  %v2028_v62 = vadd.f32 %v564_v12, %v544_v50  ;;  %v2030_v35 = vadd.f32 %v469_v45, %v449_v17  ;;  %v2893_v50 = vstv %s2889_s14 }
  0xea   : > { %v2040_v10 = vsel %vm254_vm6, %v258_v61, %v260_v16  ;;  %v262_v14 = vsel %vm254_vm6, %v260_v16, %v258_v61  ;;  %v2062_v61 = vadd.f32 %v374_v13, %v1922_v36  ;;  %v2067_v55 = vadd.f32 %v743_v30, %v723_v59 }
  0xeb   : > { %2890 = vst [vmem:[#allocation61_spill] sm:$0xff] %v2040_v10  ;;  %v2050_v45 = vsel %vm263_vm7, %v262_v14, 0.0  ;;  %v289_v25 = vpop.permute.xlu0 %288  ;;  %v552_v17 = vmul.f32 %v550_v32, %v2040_v10  ;;  %v457_v12 = vmul.f32 %v2779_v33, %v2040_v10  ;;  %v362_v16 = vmul.f32 %v2892_v20, %v2040_v10 }
  0xec   : > { %v731_v15 = vmul.f32 %v2893_v50, %v2040_v10  ;;  %v551_v14 = vmul.f32 %v550_v32, %v2050_v45  ;;  %v563_v30 = vadd.f32 %v561_v18, %v1724_v4 }
  0xed   : > { %v554_v24 = vadd.f32 %v552_v17, %v1913_v23  ;;  %v459_v34 = vadd.f32 %v457_v12, %v1920_v0  ;;  %v364_v22 = vadd.f32 %v362_v16, %v1935_v47  ;;  %v2894_v47 = vstv %s2888_s19  ;;  %s2131_s19 = sld [smem:[#allocation6 + $0x52]] }
  0xee   : > { %v733_v20 = vadd.f32 %v731_v15, %v1941_v21  ;;  %v553_v36 = vadd.f32 %v551_v14, %v1954_v2  ;;  %v361_v21 = vmul.f32 %v2894_v47, %v2050_v45  ;;  %v565_v4 = vadd.f32 %v563_v30, %v1966_v60 }
  0xef   : > { %v2082_v32 = vadd.f32 %v1794_v40, %v554_v24  ;;  %v2085_v23 = vadd.f32 %v1806_v52, %v459_v34  ;;  %v2088_v0 = vadd.f32 %v1811_v43, %v364_v22  ;;  %v373_v52 = vadd.f32 %v371_v63, %v1727_v5  ;;  %v310_v63 = vpop.permute.xlu2 %309 }
  0xf0   : > { %v2095_v2 = vadd.f32 %v1826_v7, %v733_v20  ;;  %v2099_v40 = vadd.f32 %v1855_v28, %v553_v36  ;;  %v363_v43 = vadd.f32 %v361_v21, %v1959_v29  ;;  %v2896_v22 = vstv %s1757_s2  ;;  %s2921_s2 = sld [smem:[#allocation25_spill]] }
  0xf1   : > { %v291_v18 = vpop.permute.xlu1 %290  ;;  %v825_v59 = vmul.f32 %v2896_v22, %v2050_v45  ;;  %v837_v24 = vadd.f32 %v835_v3, %v1739_v9  ;;  %v847_v7 = vmul.f32 %v2781_v58, %v1572_v38  ;;  %v375_v29 = vadd.f32 %v373_v52, %v1977_v42 }
  0xf2   : > { %v2112_v28 = vsel %vm292_vm8, %v289_v25, %v291_v18  ;;  %v294_v5 = vsel %vm292_vm8, %v291_v18, %v289_v25  ;;  %v2787_v60 = vstv %s2046_s0  ;;  %v2898_v3 = vstv %s2895_s13  ;;  %s2160_s13 = sld [smem:[#allocation6 + $0x59]] }
  0xf3   : > { %v2120_v9 = vsel %vm302_vm9, %v294_v5, 0.0  ;;  %v298_v34 = vpop.permute.xlu0 %297  ;;  %v581_v15 = vmul.f32 %v2898_v3, %v2112_v28  ;;  %v2126_v50 = vadd.f32 %v1968_v57, %v363_v43  ;;  %v2900_v42 = vstv %s1751_s11  ;;  %s2174_s11 = sld [smem:[#allocation6 + $0x2f]] }
  0xf4   : > { %2897 = vst [vmem:[#allocation62_spill] sm:$0xff] %v2120_v9  ;;  %v391_v25 = vmul.f32 %v2900_v42, %v2112_v28  ;;  %v2135_v17 = vsel %vm292_vm8, %v296_v8, %v298_v34  ;;  %v300_v12 = vsel %vm292_vm8, %v298_v34, %v296_v8  ;;  %v2901_v16 = vmov %v2898_v3  ;;  %s2917_s0 = sld [smem:[#allocation26_spill]] }
  0xf5   : > { %v582_v14 = vmul.f32 %v2901_v16, %v2120_v9  ;;  %v2902_v57 = vstv %s2872_s25  ;;  %v2149_v36 = vsel %vm302_vm9, %v300_v12, 0.0  ;;  %v2904_v30 = vmov %v2900_v42 }
  0xf6   : > { %v487_v20 = vmul.f32 %v2902_v57, %v2120_v9  ;;  %2903 = vst [vmem:[#allocation63_spill] sm:$0xff] %v2149_v36  ;;  %v392_v47 = vmul.f32 %v2904_v30, %v2120_v9  ;;  %v2905_v21 = vstv %s1778_s21  ;;  %v2906_v8 = vstv %s1690_s8  ;;  %s2181_s8 = sld [smem:[#allocation6 + $0x60]] }
  0xf7   : > { %v761_v52 = vmul.f32 %v2905_v21, %v2120_v9  ;;  %v585_v18 = vmul.f32 %v2906_v8, %v2135_v17  ;;  %v2907_v43 = vmov %v2906_v8  ;;  %v2908_v5 = vstv %s2899_s7 }
  0xf8   : > { %v586_v22 = vmul.f32 %v2907_v43, %v2149_v36  ;;  %v491_v34 = vmul.f32 %v2908_v5, %v2149_v36  ;;  %v2909_v3 = vstv %s1767_s4  ;;  %v2910_v12 = vstv %s1788_s12  ;;  %s2915_s4 = sld [smem:[#allocation24_spill]] }
  0xf9   : > { %v396_v42 = vmul.f32 %v2909_v3, %v2149_v36  ;;  %v765_v16 = vmul.f32 %v2910_v12, %v2149_v36  ;;  %v587_v57 = vadd.f32 %v585_v18, %v581_v15  ;;  %v2911_v30 = vmov %v2909_v3  ;;  %v308_v33 = vpop.permute.xlu1 %307  ;;  %s2924_s12 = sld [smem:[#allocation36_spill]] }
  0xfa   : > { %v395_v21 = vmul.f32 %v2911_v30, %v2135_v17  ;;  %v827_v8 = vadd.f32 %v825_v59, %v1973_v6  ;;  %v839_v43 = vadd.f32 %v837_v24, %v1990_v26  ;;  %v588_v5 = vadd.f32 %v586_v22, %v582_v14  ;;  %v327_v22 = vpop.permute.xlu2 %326 }
  0xfb   : > { %v493_v58 = vadd.f32 %v491_v34, %v487_v20  ;;  %v398_v13 = vadd.f32 %v396_v42, %v392_v47  ;;  %v767_v3 = vadd.f32 %v765_v16, %v761_v52  ;;  %v2184_v15 = vadd.f32 %v587_v57, %v565_v4 }
  0xfc   : > { %v397_v18 = vadd.f32 %v395_v21, %v391_v25  ;;  %v849_v6 = vadd.f32 %v847_v7, %v1982_v56  ;;  %v855_v26 = vmul.f32 %v2787_v60, %v2112_v28  ;;  %v2192_v59 = vsel %vm311_vm10, %v308_v33, %v310_v63  ;;  %v315_v25 = vpop.permute.xlu0 %314 }
  0xfd   : > { %v313_v24 = vsel %vm311_vm10, %v310_v63, %v308_v33  ;;  %v2198_v4 = vadd.f32 %v588_v5, %v2028_v62  ;;  %v2201_v56 = vadd.f32 %v493_v58, %v2030_v35  ;;  %v2208_v33 = vadd.f32 %v398_v13, %v2062_v61 }
  0xfe   : > { %v2205_v7 = vsel %vm321_vm11, %v313_v24, 0.0  ;;  %v2211_v63 = vadd.f32 %v767_v3, %v2067_v55  ;;  %v2913_v62 = vstv %s1796_s28  ;;  %v2916_v20 = vstv %s1808_s27  ;;  %s2923_s28 = sld [smem:[#allocation35_spill]] }
  0xff   : > { %2912 = vst [vmem:[#allocation64_spill] sm:$0xff] %v2205_v7  ;;  %v593_v58 = vmul.f32 %v2913_v62, %v2192_v59  ;;  %v2914_v35 = vmov %v2913_v62  ;;  %v499_v47 = vmul.f32 %v2916_v20, %v2205_v7  ;;  %v2918_v52 = vstv %s1824_s30  ;;  %s2407_s30 = sld [smem:[#allocation6 + $0xd]] }
 0x100   : > { %v594_v14 = vmul.f32 %v2914_v35, %v2205_v7  ;;  %v404_v61 = vmul.f32 %v2918_v52, %v2205_v7  ;;  %v2919_v13 = vstv %s1850_s29  ;;  %v2228_v34 = vadd.f32 %v397_v18, %v375_v29 }
 0x101   : > { %v773_v55 = vmul.f32 %v2919_v13, %v2205_v7  ;;  %v2922_v42 = vmov %v2918_v52  ;;  %v2233_v16 = vadd.f32 %v849_v6, %v827_v8  ;;  %v2785_v57 = vstv %s2131_s19  ;;  %v317_v60 = vpop.permute.xlu1 %316 }
 0x102   : > { %v403_v12 = vmul.f32 %v2922_v42, %v2192_v59  ;;  %v859_v30 = vmul.f32 %v2785_v57, %v2135_v17  ;;  %v2786_v21 = vstv %s2145_s9  ;;  %v2925_v18 = vstv %s2915_s4  ;;  %v336_v11 = vpop.permute.xlu2 %335  ;;  %s2972_s4 = sld [smem:[#allocation53_spill]] }
 0x103   : > { %v867_v24 = vmul.f32 %v2786_v21, %v2192_v59  ;;  %v442_v62 = vmul.f32 %v2925_v18, %v1820_v1  ;;  %v2926_v8 = vstv %s2917_s0  ;;  %v2927_v20 = vstv %s2920_s18  ;;  %s2395_s18 = sld [smem:[#allocation6 + $0x37]]  ;;  %s1440_s0 = smov 3  }
 0x104   : > { %v446_v6 = vmul.f32 %v2926_v8, %v1885_v54  ;;  %v861_v35 = vadd.f32 %v859_v30, %v855_v26  ;;  %v452_v52 = vmul.f32 %v2927_v20, %v1908_v19  ;;  %v2928_v13 = vstv %s2887_s15  ;;  %s2421_s15 = sld [smem:[#allocation6 + $0x3e]] }
 0x105   : > { %v456_v42 = vmul.f32 %v2928_v13, %v2050_v45  ;;  %v2929_v57 = vstv %s2921_s2  ;;  %v2930_v8 = vstv %s1630_s5  ;;  %v2931_v30 = vstv %s2923_s28  ;;  %s2933_s2 = sld [smem:[#allocation57_spill]] }
 0x106   : > { %v2261_v21 = vmul.f32 %v2929_v57, %v1688_v53  ;;  %v2263_v18 = vadd.f32 %v446_v6, %v442_v62  ;;  %v466_v26 = vmul.f32 %v2930_v8, %v1995_v48  ;;  %v2271_v29 = vmul.f32 %v2931_v30, %v1568_v31  ;;  %s2958_s5 = sld [smem:[#allocation28_spill]] }
 0x107   : > { %v2932_v20 = vstv %s2924_s12  ;;  %v2280_v57 = vsel %vm311_vm10, %v315_v25, %v317_v60  ;;  %v319_v62 = vsel %vm311_vm10, %v317_v60, %v315_v25  ;;  %v2284_v6 = vadd.f32 %v861_v35, %v839_v43  ;;  %s2378_s12 = sld [smem:[#allocation6 + $0x6]] }
 0x108   : > { %v2276_v13 = vmul.f32 %v2932_v20, %v1572_v38  ;;  %v2286_v8 = vadd.f32 %v456_v42, %v452_v52  ;;  %v2290_v30 = vsel %vm321_vm11, %v319_v62, 0.0  ;;  %v329_v20 = vpop.permute.xlu0 %328  ;;  %v2934_v3 = vstv %s1832_s3  ;;  %s1438_s3 = smov 1   ;;  %s2450_s28 = sld [smem:[#allocation6 + $0x4c]] }
 0x109   : > { %v597_v5 = vmul.f32 %v2934_v3, %v2280_v57  ;;  %v2935_v7 = vstv %s1900_s10  ;;  %v2936_v9 = vstv %s2160_s13  ;;  %v2303_v43 = vsel %vm330_vm12, %v327_v22, %v329_v20 }
 0x10a   : > { %v407_v36 = vmul.f32 %v2935_v7, %v2280_v57  ;;  %v871_v60 = vmul.f32 %v2936_v9, %v2280_v57  ;;  %v332_v25 = vsel %vm330_vm12, %v329_v20, %v327_v22  ;;  %v2937_v35 = vmov %v2934_v3 }
 0x10b   : > { %v598_v52 = vmul.f32 %v2937_v35, %v2290_v30  ;;  %v2938_v3 = vstv %s1839_s1  ;;  %v2315_v7 = vsel %vm340_vm13, %v332_v25, 0.0  ;;  %v2939_v9 = vstv %s1900_s10  ;;  %s1439_s10 = smov 2  }
 0x10c   : > { %v503_v42 = vmul.f32 %v2938_v3, %v2290_v30  ;;  %v408_v62 = vmul.f32 %v2939_v9, %v2290_v30  ;;  %v777_v39 = vmul.f32 %v2940_v41, %v2290_v30  ;;  %v599_v51 = vadd.f32 %v597_v5, %v593_v58 }
 0x10d   : > { %v600_v49 = vadd.f32 %v598_v52, %v594_v14  ;;  %v2941_v22 = vstv %s1863_s16  ;;  %v2942_v3 = vstv %s2933_s2  ;;  %v416_v46 = vmul.f32 %v2943_v27, %v2315_v7  ;;  %v334_v52 = vpop.permute.xlu1 %333  ;;  %s2393_s16 = sld [smem:[#allocation6 + $0x14]] }
 0x10e   : > { %v606_v20 = vmul.f32 %v2941_v22, %v2315_v7  ;;  %v505_v35 = vadd.f32 %v503_v42, %v499_v47  ;;  %v511_v10 = vmul.f32 %v2942_v3, %v2315_v7  ;;  %v410_v25 = vadd.f32 %v408_v62, %v404_v61 }
 0x10f   : > { %v779_v9 = vadd.f32 %v777_v39, %v773_v55  ;;  %v2944_v38 = vstv %s1943_s20  ;;  %v602_v58 = vadd.f32 %v600_v49, %v2082_v32  ;;  %v601_v47 = vadd.f32 %v599_v51, %v2099_v40 }
 0x110   : > { %v785_v41 = vmul.f32 %v2944_v38, %v2315_v7  ;;  %v507_v14 = vadd.f32 %v505_v35, %v2085_v23  ;;  %v2945_v5 = vmov %v2941_v22  ;;  %v412_v39 = vadd.f32 %v410_v25, %v2088_v0 }
 0x111   : > { %v605_v61 = vmul.f32 %v2945_v5, %v2303_v43  ;;  %v781_v27 = vadd.f32 %v779_v9, %v2095_v2  ;;  %v409_v38 = vadd.f32 %v407_v36, %v403_v12  ;;  %v2946_v49 = vstv %s1915_s23  ;;  %s2957_s23 = sld [smem:[#allocation27_spill]] }
 0x112   : > { %v415_v32 = vmul.f32 %v2946_v49, %v2303_v43  ;;  %v2348_v23 = vsel %vm330_vm12, %v334_v52, %v336_v11  ;;  %v338_v51 = vsel %vm330_vm12, %v336_v11, %v334_v52  ;;  %v873_v40 = vadd.f32 %v871_v60, %v867_v24 }
 0x113   : > { %v2947_v55 = vstv %s2174_s11  ;;  %v2357_v0 = vsel %vm340_vm13, %v338_v51, 0.0  ;;  %v2948_v2 = vstv %s1948_s22  ;;  %v411_v12 = vadd.f32 %v409_v38, %v2126_v50  ;;  %s2959_s22 = sld [smem:[#allocation32_spill]] }
 0x114   : > { %v879_v42 = vmul.f32 %v2947_v55, %v2303_v43  ;;  %v609_v36 = vmul.f32 %v2948_v2, %v2348_v23  ;;  %v2949_v62 = vstv %s2004_s6  ;;  %v2950_v35 = vmov %v2948_v2  ;;  %s2964_s6 = sld [smem:[#allocation47_spill]] }
 0x115   : > { %v419_v22 = vmul.f32 %v2949_v62, %v2348_v23  ;;  %v610_v3 = vmul.f32 %v2950_v35, %v2357_v0  ;;  %v2951_v11 = vstv %s1964_s24  ;;  %v2952_v60 = vmov %v2949_v62 }
 0x116   : > { %v515_v24 = vmul.f32 %v2951_v11, %v2357_v0  ;;  %v420_v25 = vmul.f32 %v2952_v60, %v2357_v0  ;;  %v2953_v9 = vstv %s2014_s26  ;;  %v611_v52 = vadd.f32 %v609_v36, %v605_v61 }
 0x117   : > { %v789_v5 = vmul.f32 %v2953_v9, %v2357_v0  ;;  %v421_v49 = vadd.f32 %v419_v22, %v415_v32  ;;  %v875_v50 = vadd.f32 %v873_v40, %v2233_v16  ;;  %v2954_v38 = vstv %s2181_s8 }
 0x118   : > { %v883_v51 = vmul.f32 %v2954_v38, %v2348_v23  ;;  %v612_v55 = vadd.f32 %v610_v3, %v606_v20  ;;  %v517_v2 = vadd.f32 %v515_v24, %v511_v10  ;;  %v422_v62 = vadd.f32 %v420_v25, %v416_v46 }
 0x119   : > { %v791_v35 = vadd.f32 %v789_v5, %v785_v41  ;;  %v613_v11 = vadd.f32 %v611_v52, %v2184_v15  ;;  %v423_v60 = vadd.f32 %v421_v49, %v2228_v34  ;;  %v468_v9 = vadd.f32 %v466_v26, %v2261_v21 }
 0x11a   : > { %v885_v44 = vadd.f32 %v883_v51, %v879_v42  ;;  %v614_v37 = vadd.f32 %v612_v55, %v2198_v4  ;;  %v519_v61 = vadd.f32 %v517_v2, %v2201_v56  ;;  %v424_v16 = vadd.f32 %v422_v62, %v2208_v33 }
 0x11b   : > { %v793_v20 = vadd.f32 %v791_v35, %v2211_v63  ;;  %v615_v10 = vadd.f32 %v613_v11, %v601_v47  ;;  %v425_v46 = vadd.f32 %v423_v60, %v411_v12  ;;  %v470_v15 = vadd.f32 %v468_v9, %v2263_v18 }
 0x11c   : > { %v887_v41 = vadd.f32 %v885_v44, %v2284_v6  ;;  %v616_v34 = vadd.f32 %v614_v37, %v602_v58  ;;  %v521_v4 = vadd.f32 %v519_v61, %v507_v14  ;;  %v426_v56 = vadd.f32 %v424_v16, %v412_v39 }
 0x11d   : > { %v795_v21 = vadd.f32 %v793_v20, %v781_v27  ;;  %v480_v63 = vadd.f32 %v2276_v13, %v2271_v29  ;;  %v2955_v44 = vstv %s2872_s25  ;;  %v2956_v26 = vstv %s2899_s7  ;;  %s2963_s25 = sld [smem:[#allocation29_spill]]  ;;  %v2976_v20 = vld [vmem:[#allocation21_spill] sm:$0xff] }
 0x11e   : > { %v2397_v33 = vadd.f32 %v887_v41, %v875_v50  ;;  %v486_v18 = vmul.f32 %v2955_v44, %v2112_v28  ;;  %v490_v6 = vmul.f32 %v2956_v26, %v2135_v17  ;;  %619 = vrot.lane.b32.xlu0 %v616_v34, %s1438_s3  ;;  %524 = vrot.lane.b32.xlu2 %v521_v4, %s1439_s10  ;;  %v2960_v37 = vstv %s1808_s27  ;;  %s2431_s27 = sld [smem:[#allocation6 + $0x45]] }
 0x11f   : > { %v498_v29 = vmul.f32 %v2960_v37, %v2192_v59  ;;  %v2961_v13 = vstv %s1839_s1  ;;  %v2962_v14 = vstv %s2933_s2  ;;  %v905_v39 = vstv %s2378_s12  ;;  %429 = vrot.lane.b32.xlu1 %v426_v56, %s1440_s0  ;;  %s2967_s1 = sld [smem:[#allocation44_spill]] }
 0x120   : > { %v502_v58 = vmul.f32 %v2961_v13, %v2280_v57  ;;  %v510_v47 = vmul.f32 %v2962_v14, %v2303_v43  ;;  %v482_v27 = vadd.f32 %v480_v63, %v2286_v8  ;;  %v492_v32 = vadd.f32 %v490_v6, %v486_v18  ;;  %s2970_s7 = sld [smem:[#allocation46_spill]] }
 0x121   : > { %v2965_v40 = vstv %s1964_s24  ;;  %v2966_v36 = vstv %s2957_s23  ;;  %v2968_v3 = vstv %s2958_s5  ;;  %v2969_v25 = vstv %s2959_s22  ;;  %s2442_s24 = sld [smem:[#allocation6 + $0x1b]] }
 0x122   : > { %v514_v42 = vmul.f32 %v2965_v40, %v2348_v23  ;;  %v716_v12 = vmul.f32 %v2966_v36, %v1820_v1  ;;  %v504_v22 = vadd.f32 %v502_v58, %v498_v29  ;;  %v720_v24 = vmul.f32 %v2968_v3, %v1885_v54  ;;  %s2463_s2 = sld [smem:[#allocation6 + $0x53]] }
 0x123   : > { %v726_v5 = vmul.f32 %v2969_v25, %v1908_v19  ;;  %v2971_v8 = vstv %s2889_s14  ;;  %v494_v49 = vadd.f32 %v492_v32, %v470_v15  ;;  %v2973_v38 = vstv %s2963_s25  ;;  %s2455_s14 = sld [smem:[#allocation6 + $0x22]] }
 0x124   : > { %v730_v52 = vmul.f32 %v2971_v8, %v2050_v45  ;;  %v516_v50 = vadd.f32 %v514_v42, %v510_v47  ;;  %v736_v51 = vmul.f32 %v2973_v38, %v1688_v53  ;;  %v2974_v55 = vstv %s2964_s6  ;;  %s2477_s23 = sld [smem:[#allocation6 + $0x29]]  ;;  %v2984_v42 = vld [vmem:[#allocation55_spill] sm:$0xff] }
 0x125   : > { %v740_v2 = vmul.f32 %v2974_v55, %v1995_v48  ;;  %v506_v62 = vadd.f32 %v504_v22, %v482_v27  ;;  %v722_v35 = vadd.f32 %v720_v24, %v716_v12  ;;  %v2975_v60 = vstv %s2967_s1  ;;  %v2988_v55 = vld [vmem:[#allocation45_spill] sm:$0xff]  ;;  %s2995_s12 = sld [smem:[#allocation43_spill]] }
 0x126   : > { %v732_v11 = vadd.f32 %v730_v52, %v726_v5  ;;  %v748_v9 = vmul.f32 %v2975_v60, %v1568_v31  ;;  %v518_v61 = vadd.f32 %v516_v50, %v494_v49  ;;  %v2977_v41 = vstv %s2970_s7  ;;  %617 = vrot.lane.b32.xlu2 %v615_v10, %s1438_s3  ;;  %427 = vrot.lane.b32.xlu0 %v425_v46, %s1440_s0  ;;  %v2985_v10 = vld [vmem:[#allocation56_spill] sm:$0xff]  ;;  %v2986_v5 = vld [vmem:[#allocation58_spill] sm:$0xff]  ;;  %s2999_s3 = sld [smem:[#allocation40_spill]]  ;;  %s1443_s0 = smov 125  }
 0x127   : > { %v742_v16 = vadd.f32 %v740_v2, %v736_v51  ;;  %v752_v15 = vmul.f32 %v2977_v41, %v2976_v20  ;;  %v2978_v34 = vstv %s1778_s21  ;;  %v2979_v56 = vstv %s2972_s4  ;;  %s2482_s21 = sld [smem:[#allocation6 + $0x5a]]  ;;  %v2990_v41 = vld [vmem:[#allocation22_spill] sm:$0xff] }
 0x128   : > { %v760_v4 = vmul.f32 %v2978_v34, %v2112_v28  ;;  %v764_v63 = vmul.f32 %v2979_v56, %v2135_v17  ;;  %v2980_v44 = vstv %s1850_s29  ;;  %v2981_v26 = vstv %s1927_s17  ;;  %s2490_s17 = sld [smem:[#allocation6 + $0x30]]  ;;  %s1441_s29 = smov 127   ;;  %v2991_v34 = vld [vmem:[#allocation23_spill] sm:$0xff] }
 0x129   : > { %v772_v18 = vmul.f32 %v2980_v44, %v2192_v59  ;;  %v776_v6 = vmul.f32 %v2981_v26, %v2280_v57  ;;  %v2982_v37 = vstv %s1943_s20  ;;  %v520_v13 = vadd.f32 %v518_v61, %v506_v62  ;;  %798 = vrot.lane.b32.xlu1 %v795_v21, %s1441_s29  ;;  %v2987_v21 = vld [vmem:[#allocation61_spill] sm:$0xff]  ;;  %v2989_v61 = vld [vmem:[#allocation60_spill] sm:$0xff]  ;;  %s1442_s20 = smov 126   ;;  %s3000_s5 = sld [smem:[#allocation51_spill]] }
 0x12a   : > { %v784_v29 = vmul.f32 %v2982_v37, %v2303_v43  ;;  %v744_v58 = vadd.f32 %v742_v16, %v722_v35  ;;  %v754_v14 = vadd.f32 %v752_v15, %v748_v9  ;;  %v2983_v47 = vstv %s2014_s26  ;;  %s2498_s26 = sld [smem:[#allocation6 + $0x61]]  ;;  %v2992_v37 = vld [vmem:[#allocation62_spill] sm:$0xff] }
 0x12b   : > { %v788_v27 = vmul.f32 %v2983_v47, %v2348_v23  ;;  %v766_v32 = vadd.f32 %v764_v63, %v760_v4  ;;  %v778_v40 = vadd.f32 %v776_v6, %v772_v18  ;;  %v907_v36 = vmul.f32 %v905_v39, %v2984_v42  ;;  %v2994_v47 = vld [vmem:[#allocation64_spill] sm:$0xff]  ;;  %s2543_s22 = sld [smem:[#allocation6 + $0x11]] }
 0x12c   : > { %v909_v12 = vstv %s2395_s18  ;;  %v756_v22 = vadd.f32 %v754_v14, %v732_v11  ;;  %v915_v25 = vstv %s2407_s30  ;;  %v919_v52 = vstv %s2421_s15  ;;  %s2997_s18 = sld [smem:[#allocation52_spill]] }
 0x12d   : > { %v790_v3 = vadd.f32 %v788_v27, %v784_v29  ;;  %v911_v24 = vmul.f32 %v909_v12, %v2985_v10  ;;  %v768_v46 = vadd.f32 %v766_v32, %v744_v58  ;;  %v917_v8 = vmul.f32 %v915_v25, %v2986_v5  ;;  %v2993_v58 = vld [vmem:[#allocation63_spill] sm:$0xff]  ;;  %s2998_s30 = sld [smem:[#allocation49_spill]] }
 0x12e   : > { %v925_v49 = vstv %s2393_s16  ;;  %v780_v50 = vadd.f32 %v778_v40, %v756_v22  ;;  %v921_v51 = vmul.f32 %v919_v52, %v2987_v21  ;;  %v929_v35 = vstv %s2431_s27  ;;  %891 = vrot.lane.b32.xlu2 %v2397_v33, %s1442_s20  ;;  %s2996_s16 = sld [smem:[#allocation41_spill]] }
 0x12f   : > { %v913_v38 = vadd.f32 %v911_v24, %v907_v36  ;;  %v927_v2 = vmul.f32 %v925_v49, %v2988_v55  ;;  %v792_v62 = vadd.f32 %v790_v3, %v768_v46  ;;  %v937_v11 = vstv %s2442_s24  ;;  %s3003_s25 = sld [smem:[#allocation59_spill]] }
 0x130   : > { %v941_v60 = vstv %s2450_s28  ;;  %v923_v9 = vadd.f32 %v921_v51, %v917_v8  ;;  %v931_v16 = vmul.f32 %v929_v35, %v2989_v61  ;;  %v939_v15 = vmul.f32 %v937_v11, %v2990_v41  ;;  %s3006_s15 = sld [smem:[#allocation31_spill]] }
 0x131   : > { %v943_v4 = vmul.f32 %v941_v60, %v2991_v34  ;;  %v794_v56 = vadd.f32 %v792_v62, %v780_v50  ;;  %v949_v63 = vstv %s2455_s14  ;;  %v953_v44 = vstv %s2463_s2  ;;  %522 = vrot.lane.b32.xlu1 %v520_v13, %s1439_s10  ;;  %s3002_s10 = sld [smem:[#allocation42_spill]] }
 0x132   : > { %v961_v18 = vstv %s2477_s23  ;;  %v933_v26 = vadd.f32 %v931_v16, %v927_v2  ;;  %v951_v29 = vmul.f32 %v949_v63, %v2992_v37  ;;  %v955_v14 = vmul.f32 %v953_v44, %v2993_v58  ;;  %s2551_s6 = sld [smem:[#allocation6 + $0x3]] }
 0x133   : > { %v945_v6 = vadd.f32 %v943_v4, %v939_v15  ;;  %796 = vrot.lane.b32.xlu0 %v794_v56, %s1441_s29  ;;  %v963_v27 = vmul.f32 %v961_v18, %v2994_v47  ;;  %v965_v32 = vstv %s2482_s21  ;;  %v973_v40 = vstv %s2490_s17  ;;  %s2562_s1 = sld [smem:[#allocation6 + $0x34]] }
 0x134   : > { %v935_v36 = vadd.f32 %v933_v26, %v913_v38  ;;  %v957_v22 = vadd.f32 %v955_v14, %v951_v29  ;;  %v967_v3 = vmul.f32 %v965_v32, %v2290_v30  ;;  %v906_v24 = vmul.f32 %v905_v39, %v1820_v1  ;;  %s2570_s27 = sld [smem:[#allocation6 + $0x42]] }
 0x135   : > { %v947_v46 = vadd.f32 %v945_v6, %v923_v9  ;;  %v975_v8 = vmul.f32 %v973_v40, %v2315_v7  ;;  %v977_v50 = vstv %s2498_s26  ;;  %v910_v33 = vmul.f32 %v909_v12, %v1885_v54  ;;  %s2584_s7 = sld [smem:[#allocation6 + $0xa]] }
 0x136   : > { %v969_v51 = vadd.f32 %v967_v3, %v963_v27  ;;  %v979_v2 = vmul.f32 %v977_v50, %v2357_v0  ;;  %v916_v62 = vmul.f32 %v915_v25, %v1908_v19  ;;  %v920_v13 = vmul.f32 %v919_v52, %v2050_v45  ;;  %s2603_s24 = sld [smem:[#allocation6 + $0x57]] }
 0x137   : > { %v959_v38 = vadd.f32 %v957_v22, %v935_v36  ;;  %v926_v16 = vmul.f32 %v925_v49, %v1688_v53  ;;  %v930_v15 = vmul.f32 %v929_v35, %v1995_v48  ;;  %v938_v39 = vmul.f32 %v937_v11, %v1568_v31  ;;  %s2607_s4 = sld [smem:[#allocation6 + $0x26]] }
 0x138   : > { %v981_v9 = vadd.f32 %v979_v2, %v975_v8  ;;  %v912_v4 = vadd.f32 %v910_v33, %v906_v24  ;;  %v922_v56 = vadd.f32 %v920_v13, %v916_v62  ;;  %v942_v26 = vmul.f32 %v941_v60, %v2976_v20  ;;  %s2615_s28 = sld [smem:[#allocation6 + $0x2d]] }
 0x139   : > { %v971_v12 = vadd.f32 %v969_v51, %v947_v46  ;;  %v932_v6 = vadd.f32 %v930_v15, %v926_v16  ;;  %v950_v29 = vmul.f32 %v949_v63, %v2112_v28  ;;  %v954_v25 = vmul.f32 %v953_v44, %v2135_v17  ;;  %s2625_s14 = sld [smem:[#allocation6 + $0x5e]] }
 0x13a   : > { %v983_v52 = vadd.f32 %v981_v9, %v959_v38  ;;  %v944_v49 = vadd.f32 %v942_v26, %v938_v39  ;;  %v962_v35 = vmul.f32 %v961_v18, %v2192_v59  ;;  %v966_v11 = vmul.f32 %v965_v32, %v2280_v57  ;;  %s3020_s2 = sld [smem:[#allocation20_spill]] }
 0x13b   : > { %v934_v14 = vadd.f32 %v932_v6, %v912_v4  ;;  %v956_v27 = vadd.f32 %v954_v25, %v950_v29  ;;  %v974_v60 = vmul.f32 %v973_v40, %v2303_v43  ;;  %v978_v36 = vmul.f32 %v977_v50, %v2348_v23  ;;  %s3021_s23 = sld [smem:[#allocation15_spill]] }
 0x13c   : > { %v985_v63 = vadd.f32 %v983_v52, %v971_v12  ;;  %v946_v22 = vadd.f32 %v944_v49, %v922_v56  ;;  %v968_v44 = vadd.f32 %v966_v11, %v962_v35  ;;  %v3001_v3 = vstv %s2995_s12 }
 0x13d   : > { %v816_v24 = vmul.f32 %v3001_v3, %v2985_v10  ;;  %v958_v18 = vadd.f32 %v956_v27, %v934_v14  ;;  %v980_v32 = vadd.f32 %v978_v36, %v974_v60  ;;  %v3004_v46 = vstv %s2996_s16 }
 0x13e   : > { %v812_v8 = vmul.f32 %v3004_v46, %v2984_v42  ;;  %v3005_v40 = vstv %s2997_s18  ;;  %988 = vrot.lane.b32.xlu2 %v985_v63, %s1443_s0  ;;  %v970_v50 = vadd.f32 %v968_v44, %v946_v22  ;;  %v3007_v51 = vstv %s2998_s30 }
 0x13f   : > { %v826_v33 = vmul.f32 %v3005_v40, %v2987_v21  ;;  %v822_v2 = vmul.f32 %v3007_v51, %v2986_v5  ;;  %v3008_v62 = vstv %s2999_s3  ;;  %v3009_v38 = vstv %s3000_s5 }
 0x140   : > { %v832_v13 = vmul.f32 %v3008_v62, %v2988_v55  ;;  %v836_v16 = vmul.f32 %v3009_v38, %v2989_v61  ;;  %v982_v15 = vadd.f32 %v980_v32, %v958_v18  ;;  %v818_v39 = vadd.f32 %v816_v24, %v812_v8  ;;  %s1130_s21 = sshll.u32 %s3020_s2, 1  ;;  %s1023_s5 = scalar_lea.sflag [#allocation4], %s3020_s2 }
 0x141   : > { %v3010_v9 = vstv %s3002_s10  ;;  %v3011_v56 = vstv %s3003_s25  ;;  %v828_v12 = vadd.f32 %v826_v33, %v822_v2  ;;  %v3012_v29 = vstv %s3006_s15  ;;  %s1229_s17 = sshll.u32 %s3021_s23, 1  ;;  %s175_s16 = scalar_lea.vmem [#allocation7], %s1130_s21 }
 0x142   : > { %v844_v4 = vmul.f32 %v3010_v9, %v2990_v41  ;;  %v848_v26 = vmul.f32 %v3011_v56, %v2991_v34  ;;  %v838_v6 = vadd.f32 %v836_v16, %v832_v13  ;;  %v856_v25 = vmul.f32 %v3012_v29, %v2992_v37  ;;  %s1035_s18 = sshll.u32 %s175_s16, 4  ;;  %s1036_s18 = int_to_ptr.vmem [resolvable:$true] %s1035_s18 }
 0x143   : > { %v3013_v52 = vstv %s2131_s19  ;;  %v984_v35 = vadd.f32 %v982_v15, %v970_v50  ;;  %v3014_v14 = vstv %s2145_s9  ;;  %v3015_v60 = vstv %s2160_s13  ;;  %s2592_s19 = sld [smem:[#allocation6 + $0x3b]] }
 0x144   : > { %v860_v49 = vmul.f32 %v3013_v52, %v2993_v58  ;;  %v850_v11 = vadd.f32 %v848_v26, %v844_v4  ;;  %v868_v27 = vmul.f32 %v3014_v14, %v2994_v47  ;;  %v872_v36 = vmul.f32 %v3015_v60, %v2290_v30  ;;  %s2594_s9 = sld [smem:[#allocation6 + $0x18]] }
 0x145   : > { %v840_v63 = vadd.f32 %v838_v6, %v818_v39  ;;  %v3016_v44 = vstv %s2174_s11  ;;  %v3017_v24 = vstv %s2181_s8  ;;  %986 = vrot.lane.b32.xlu1 %v984_v35, %s1443_s0  ;;  %s2596_s13 = sld [smem:[#allocation6 + $0x49]]  ;;  %v635_v51 = vstv %s2562_s1 }
 0x146   : > { %v862_v22 = vadd.f32 %v860_v49, %v856_v25  ;;  %v880_v3 = vmul.f32 %v3016_v44, %v2315_v7  ;;  %v884_v18 = vmul.f32 %v3017_v24, %v2357_v0  ;;  %v874_v32 = vadd.f32 %v872_v36, %v868_v27  ;;  %s2598_s11 = sld [smem:[#allocation6 + $0x50]] }
 0x147   : > { %v852_v46 = vadd.f32 %v850_v11, %v828_v12  ;;  %s2600_s8 = sld [smem:[#allocation6 + $0x1f]]  ;;  %v651_v2 = vstv %s2543_s22  ;;  %v631_v13 = vstv %s2551_s6  ;;  %v636_v38 = vmul.f32 %v635_v51, %v1885_v54 }
 0x148   : > { %v864_v8 = vadd.f32 %v862_v22, %v840_v63  ;;  %v886_v40 = vadd.f32 %v884_v18, %v880_v3  ;;  %v637_v16 = vmul.f32 %v635_v51, %v2985_v10  ;;  %v655_v15 = vstv %s2570_s27 }
 0x149   : > { %v876_v33 = vadd.f32 %v874_v32, %v852_v46  ;;  %v653_v39 = vmul.f32 %v651_v2, %v2988_v55  ;;  %v641_v9 = vstv %s2584_s7  ;;  %v652_v4 = vmul.f32 %v651_v2, %v1688_v53 }
 0x14a   : > { %v888_v50 = vadd.f32 %v886_v40, %v864_v8  ;;  %v632_v56 = vmul.f32 %v631_v13, %v1820_v1  ;;  %v633_v26 = vmul.f32 %v631_v13, %v2984_v42  ;;  %v645_v12 = vstv %s2592_s19 }
 0x14b   : > { %v657_v54 = vmul.f32 %v655_v15, %v2989_v61  ;;  %v663_v10 = vstv %s2594_s9  ;;  %v667_v6 = vstv %s2596_s13  ;;  %v656_v55 = vmul.f32 %v655_v15, %v1995_v48 }
 0x14c   : > { %v890_v62 = vadd.f32 %v888_v50, %v876_v33  ;;  %v679_v29 = vstv %s2598_s11  ;;  %v638_v25 = vadd.f32 %v636_v38, %v632_v56  ;;  %v639_v52 = vadd.f32 %v637_v16, %v633_v26 }
 0x14d   : > { %v642_v53 = vmul.f32 %v641_v9, %v1908_v19  ;;  %v643_v49 = vmul.f32 %v641_v9, %v2986_v5  ;;  %v646_v1 = vmul.f32 %v645_v12, %v2050_v45  ;;  %v675_v42 = vstv %s2600_s8 }
 0x14e   : > { %893 = vrot.lane.b32.xlu0 %v890_v62, %s1442_s20  ;;  %v691_v35 = vstv %s2603_s24  ;;  %v647_v61 = vmul.f32 %v645_v12, %v2987_v21  ;;  %v664_v11 = vmul.f32 %v663_v10, %v1568_v31  ;;  %v668_v14 = vmul.f32 %v667_v6, %v2976_v20  ;;  %s3022_s20 = sld [smem:[#allocation67_spill]] }
 0x14f   : > { %v680_v27 = vmul.f32 %v679_v29, %v2135_v17  ;;  %v665_v48 = vmul.f32 %v663_v10, %v2990_v41  ;;  %v669_v60 = vmul.f32 %v667_v6, %v2991_v34  ;;  %v681_v19 = vmul.f32 %v679_v29, %v2993_v58 }
 0x150   : > { %v687_v5 = vstv %s2607_s4  ;;  %v658_v45 = vadd.f32 %v656_v55, %v652_v4  ;;  %v659_v36 = vadd.f32 %v657_v54, %v653_v39  ;;  %v676_v63 = vmul.f32 %v675_v42, %v2112_v28 }
 0x151   : > { %v692_v21 = vmul.f32 %v691_v35, %v2280_v57  ;;  %v648_v22 = vadd.f32 %v646_v1, %v642_v53  ;;  %v677_v31 = vmul.f32 %v675_v42, %v2992_v37  ;;  %v693_v20 = vmul.f32 %v691_v35, %v2290_v30 }
 0x152   : > { %v699_v17 = vstv %s2615_s28  ;;  %v649_v44 = vadd.f32 %v647_v61, %v643_v49  ;;  %v670_v41 = vadd.f32 %v668_v14, %v664_v11  ;;  %v682_v3 = vadd.f32 %v680_v27, %v676_v63 }
 0x153   : > { %v688_v34 = vmul.f32 %v687_v5, %v2192_v59  ;;  %v671_v58 = vadd.f32 %v669_v60, %v665_v48  ;;  %v683_v24 = vadd.f32 %v681_v19, %v677_v31  ;;  %v689_v18 = vmul.f32 %v687_v5, %v2994_v47 }
 0x154   : > { %v703_v32 = vstv %s2625_s14  ;;  %v660_v46 = vadd.f32 %v658_v45, %v638_v25  ;;  %v700_v57 = vmul.f32 %v699_v17, %v2303_v43  ;;  %v661_v37 = vadd.f32 %v659_v36, %v639_v52  ;;  %s1033_s12 = scalar_lea.hbm %s3022_s20, %s1229_s17  ;;  %s1378_s6 = scalar_lea.hbm %s3022_s20, 4 }
 0x155   : > { %v694_v28 = vadd.f32 %v692_v21, %v688_v34  ;;  %v704_v8 = vmul.f32 %v703_v32, %v2348_v23  ;;  %v695_v40 = vadd.f32 %v693_v20, %v689_v18  ;;  %v701_v30 = vmul.f32 %v699_v17, %v2315_v7  ;;  %v3018_v7 = vld [vmem:[#allocation54_spill] sm:$0xff]  ;;  %s1037_s3 = sshll.u32 %s1033_s12, 4  ;;  %s1038_s3 = int_to_ptr.hbm [resolvable:$true] %s1037_s3 }
 0x156   : > { %v705_v33 = vmul.f32 %v703_v32, %v2357_v0  ;;  %v672_v50 = vadd.f32 %v670_v41, %v648_v22  ;;  %v684_v51 = vadd.f32 %v682_v3, %v660_v46  ;;  %v673_v2 = vadd.f32 %v671_v58, %v649_v44  ;;  %v3019_v0 = vld [vmem:[#allocation37_spill] sm:$0xff]  ;;  %s1372_s10 = sshra.s32 %s1038_s3, 4  ;;  %s1373_s10 = int_to_ptr.hbm [resolvable:$true] %s1372_s10 }
 0x157   : > { %v706_v59 = vadd.f32 %v704_v8, %v700_v57  ;;  %v685_v62 = vadd.f32 %v683_v24, %v661_v37  ;;  %v230_v12 = vand.u32 15, %v3018_v7  ;;  %vm526_vm14 = vcmp.lt.s32.totalorder %v3019_v0, 2  ;;  %s1374_s22 = scalar_lea.hbm %s1373_s10, 2  ;;  %p1379_p9 = scmp.lt.s32.totalorder %s1373_s10, %s3022_s20 }
 0x158   : > { %v707_v13 = vadd.f32 %v705_v33, %v701_v30  ;;  %v696_v47 = vadd.f32 %v694_v28, %v672_v50  ;;  %v697_v16 = vadd.f32 %v695_v40, %v673_v2  ;;  %v229_v52 = vand.u32 15, %v3019_v0  ;;  %p1375_p1 = scmp.ne.s32.totalorder %s1373_s10, %s1374_s22  ;;  %p1380_p10 = scmp.lt.s32.totalorder %s1378_s6, %s1374_s22 }
 0x159   : > { %v708_v38 = vadd.f32 %v706_v59, %v684_v51  ;;  %vm530_vm15 = vcmp.ge.s32.totalorder %v230_v12, 2  ;;  %vm431_vm0 = vcmp.lt.s32.totalorder %v3019_v0, 3  ;;  %vm621_vm1 = vcmp.lt.s32.totalorder %v3019_v0, 1 }
 0x15a   : > { %v709_v15 = vadd.f32 %v707_v13, %v685_v62  ;;  %vm625_vm2 = vcmp.ge.s32.totalorder %v230_v12, 1  ;;  %vm800_vm3 = vcmp.lt.s32.totalorder %v3019_v0, 127  ;;  %vm434_vm4 = vcmp.ge.s32.totalorder %v229_v52, 3  ;;  %p1376_p4 = pnand %p1375_p1, %p1525_p3  ;;  %p1381_p2 = por %p1380_p10, %p1379_p9 }
 0x15b   : > { %v710_v39 = vadd.f32 %v708_v38, %v696_v47  ;;  %vm435_vm5 = vcmp.ge.s32.totalorder %v230_v12, 3  ;;  %vm624_vm6 = vcmp.ge.s32.totalorder %v229_v52, 1  ;;  %vm803_vm7 = vcmp.lt.s32.totalorder %v229_v52, 15 }
 0x15c   : > { %v711_v43 = vadd.f32 %v709_v15, %v697_v16  ;;  %vm804_vm8 = vcmp.lt.s32.totalorder %v230_v12, 15  ;;  %vm990_vm9 = vcmp.lt.s32.totalorder %v3019_v0, 125  ;;  %vm529_vm10 = vcmp.ge.s32.totalorder %v229_v52, 2  ;;  %p1377_p8 = pneg %p1376_p4 }
 0x15d   : > { %vm993_vm11 = vcmp.lt.s32.totalorder %v229_v52, 13  ;;  %vm994_vm12 = vcmp.lt.s32.totalorder %v230_v12, 13  ;;  %vm895_vm13 = vcmp.lt.s32.totalorder %v3019_v0, 126 }
 0x15e   : > { %p1382_p11 = pnand %p1381_p2, %p1377_p8 }
 0x178   : > { %v525_v23 = vpop.permute.xlu2 %524 }
 0x180   : > { %v618_v26 = vpop.permute.xlu2 %617 }
 0x188   : > { %v892_v25 = vpop.permute.xlu2 %891 }
 0x190   : > { %v620_v4 = vpop.permute.xlu0 %619 }
 0x191   : > { %v430_v9 = vpop.permute.xlu1 %429  ;;  %v622_v42 = vsel %vm621_vm1, %v618_v26, %v620_v4  ;;  %v623_v35 = vsel %vm621_vm1, %v620_v4, %v618_v26 }
 0x192   : > { %v626_v36 = vsel %vm624_vm6, %v623_v35, 0.0  ;;  %v627_v63 = vsel %vm625_vm2, %v622_v42, 0.0 }
 0x198   : > { %v428_v6 = vpop.permute.xlu0 %427  ;;  %v989_v27 = vpop.permute.xlu2 %988 }
 0x199   : > { %v432_v49 = vsel %vm431_vm0, %v428_v6, %v430_v9  ;;  %v433_v1 = vsel %vm431_vm0, %v430_v9, %v428_v6  ;;  %vm1014_vm0 = vcmask 1040384  }
 0x19a   : > { %v436_v48 = vsel %vm434_vm4, %v433_v1, 0.0  ;;  %v437_v60 = vsel %vm435_vm5, %v432_v49, 0.0 }
 0x19b   : > { %v799_v56 = vpop.permute.xlu1 %798  ;;  %v628_v31 = vadd.f32 %v626_v36, %v436_v48  ;;  %v629_v20 = vadd.f32 %v627_v63, %v437_v60 }
 0x1a3   : > { %v523_v54 = vpop.permute.xlu1 %522 }
 0x1a4   : > { %v527_v10 = vsel %vm526_vm14, %v523_v54, %v525_v23  ;;  %v528_v19 = vsel %vm526_vm14, %v525_v23, %v523_v54  ;;  %vm898_vm14 = vcmp.lt.s32.totalorder %v229_v52, 14 }
 0x1a5   : > { %v532_v29 = vsel %vm530_vm15, %v527_v10, 0.0  ;;  %v797_v53 = vpop.permute.xlu0 %796  ;;  %v531_v17 = vsel %vm529_vm10, %v528_v19, 0.0  ;;  %vm899_vm15 = vcmp.lt.s32.totalorder %v230_v12, 14 }
 0x1a6   : > { %v713_v55 = vadd.f32 %v711_v43, %v532_v29  ;;  %v801_v61 = vsel %vm800_vm3, %v797_v53, %v799_v56  ;;  %v802_v11 = vsel %vm800_vm3, %v799_v56, %v797_v53  ;;  %v712_v58 = vadd.f32 %v710_v39, %v531_v17 }
 0x1a7   : > { %v805_v21 = vsel %vm803_vm7, %v801_v61, 0.0  ;;  %v806_v22 = vsel %vm804_vm8, %v802_v11, 0.0  ;;  %v3024_v39 = vlaneseq }
 0x1a8   : > { %v807_v3 = vadd.f32 %v805_v21, %v628_v31  ;;  %v808_v34 = vadd.f32 %v806_v22, %v629_v20 }
 0x1a9   : > { %vm1019_vm1 = vcmp.lt.s32.totalorder %v3024_v39, 256 }
 0x1b7   : > { %v987_v14 = vpop.permute.xlu1 %986 }
 0x1b8   : > { %v991_v5 = vsel %vm990_vm9, %v987_v14, %v989_v27  ;;  %v992_v45 = vsel %vm990_vm9, %v989_v27, %v987_v14 }
 0x1b9   : > { %v995_v44 = vsel %vm993_vm11, %v991_v5, 0.0  ;;  %v996_v41 = vsel %vm994_vm12, %v992_v45, 0.0 }
 0x1ba   : > { %v997_v18 = vadd.f32 %v995_v44, %v807_v3  ;;  %v998_v32 = vadd.f32 %v996_v41, %v808_v34 }
 0x1c0   : > { %v894_v24 = vpop.permute.xlu0 %893 }
 0x1c1   : > { %v896_v46 = vsel %vm895_vm13, %v892_v25, %v894_v24  ;;  %v897_v28 = vsel %vm895_vm13, %v894_v24, %v892_v25 }
 0x1c2   : > { %v900_v57 = vsel %vm898_vm14, %v896_v46, 0.0  ;;  %v901_v8 = vsel %vm899_vm15, %v897_v28, 0.0 }
 0x1c3   : > { %v902_v37 = vadd.f32 %v900_v57, %v712_v58  ;;  %v903_v40 = vadd.f32 %v901_v8, %v713_v55 }
 0x1c5   : > { %v999_v30 = vadd.f32 %v997_v18, %v902_v37  ;;  %v1000_v33 = vadd.f32 %v998_v32, %v903_v40 }
 0x1c7   : > { %v1001_v50 = vsub.f32 0.0, %v999_v30  ;;  %v1002_v51 = vsub.f32 0.0, %v1000_v33 }
 0x1c9   : > { %v1003_v59 = vmul.f32 1.442695, %v1001_v50  ;;  %v1005_v2 = vmul.f32 1.442695, %v1002_v51 }
 0x1cb   : > { %1305 = vpow2.f32 %v1003_v59 }
 0x1cc   : > { %1307 = vpow2.f32 %v1005_v2 }
 0x1d1   : > { %v1306_v62 = vpop.eup %1305 }
 0x1d2   : > { %v1308_v13 = vpop.eup %1307  ;;  %v1007_v47 = vadd.f32 1.0, %v1306_v62 }
 0x1d3   : > { %v1008_v38 = vadd.f32 1.0, %v1308_v13 }
 0x1d5   : > { %1309 = vrcp.f32 %v1008_v38 }
 0x1d6   : > { %1311 = vrcp.f32 %v1007_v47 }
 0x1db   : > { %v1310_v16 = vpop.eup %1309 }
 0x1dc   : > { %v1013_v15 = vrot.slane %v1310_v16, 7  ;;  %v1312_v43 = vpop.eup %1311 }
 0x1de   : > { %v1015_v9 = vsel %vm1014_vm0, %v1312_v43, %v1013_v15 }
 0x1df   : > { %1021 = vst.msk [vmem:[%s175_s16] sm:$0x3] %vm1019_vm1, %v1015_v9 }
 0x1e0   : > { %1385 = shalt.err (!%p1382_p11)
}
 0x1e1   : > { %1239 = dma.vmem_to_hbm [thread:$0]  (%p1525_p3), %s1036_s18, 32, %s1038_s3, %s1023_s5  }
 0x1e2 PF: > { %s3025_s27 = sld [smem:[#allocation11_spill]] }
 0x1e3   : > { %s3027_s19 = sld [smem:[#allocation14_spill]] }
 0x1e8   : > { %s1049_s9 = sand.u32 1, %s3025_s27  }
 0x1e9   : > { %p3028_p12 = scmp.ge.s32.totalorder %s3027_s19, 2  ;;  %s1050_s13 = scalar_lea.sflag [#allocation4], %s1049_s9 }
 0x1eb   : > { %p1250_p13 = pnand %p3028_p12, %p1494_p6 }
 0x1ed   : > { %p1251_p0 = pneg %p1250_p13 }
 0x1ef   : > { %1411 = dma.done.wait (%p1251_p0), %s1050_s13, 32  }
 0x1f0   : > { %1413 = vsyncadd (%p1251_p0), %s1050_s13, 4294967264  ;;  %s3029_s12 = sld [smem:[#allocation17_spill]] }
 0x1f1   : > { %s3030_s9 = sld [smem:[#allocation12_spill]] }
 0x1f2   : > { %s3031_s10 = sld [smem:[#allocation13_spill]] }
 0x1f3   : > { %s3032_s11 = sld [smem:[#allocation18_spill]] }
 0x1f6   : > { %p16_p5 = scmp.ge.s32.totalorder %s3029_s12, 4  }
 0x1f8   :  { %18 = sbr.rel (!%p16_p5) target bundleno = 10 (0xa), region = 78 }
 0x1fd   :  { %1056 = vsyncpa [#allocation3], 1 }
 0x1fe   :  { %1058 = vsyncpa [#allocation3 + $0x1], 1 }
 0x1ff   :  { %1059 = vsyncpa [#allocation4], 1 }
 0x200   :  { %1061 = vsyncpa [#allocation4 + $0x1], 1 }
 0x201   :  { %1062 = vsyncpa [#allocation5], 1 }
 0x202   :  { %1064 = vsyncpa [#allocation5 + $0x1], 1 }

</bundles_post_ra>
